<compile_context>
chip_gen: v5e
topology: v5e:2x2
jax: 0.10.0
libtpu: 0.0.40
codegen_flags: <defaults>
</compile_context>

<pallas_src>
import jax
import jax.numpy as jnp
import numpy as np
from jax import lax
from jax.experimental import pallas as pl
from jax.experimental.pallas import tpu as pltpu

_SQRT1_2 = 0.7071067811865476
_EPS = 1e-6

# Abramowitz & Stegun 7.1.26 erf coefficients (max abs error ~1.5e-7).
_ERF_A = (0.254829592, -0.284496736, 1.421413741, -1.453152027, 1.061405429)
_ERF_P = 0.3275911


# ---------------------------------------------------------------------------
# GELU helpers (torch.nn.GELU() default = exact, erf-based)
# ---------------------------------------------------------------------------
def _gelu_exact(x):
    """Exact erf-based GELU; used in plain-JAX glue and the reference."""
    return 0.5 * x * (1.0 + lax.erf(x * _SQRT1_2))


def _gelu_in_kernel(x):
    # erf-based GELU via the A&S polynomial (fp32-accurate); the reciprocal
    # and exp land on the otherwise-idle EUP slot.
    z = x * _SQRT1_2
    za = jnp.abs(z)
    t = pl.reciprocal(1.0 + _ERF_P * za, approx=True)
    a1, a2, a3, a4, a5 = _ERF_A
    poly = ((((a5 * t + a4) * t + a3) * t + a2) * t + a1) * t
    erf_abs = 1.0 - poly * jnp.exp(-za * za)
    erf = jnp.where(z >= 0.0, erf_abs, -erf_abs)
    return 0.5 * x * (1.0 + erf)


# ---------------------------------------------------------------------------
# Plain-JAX glue: convs for the (batch-independent) parameter branches,
# bilinear interpolation with align_corners=True, and the reference model.
# ---------------------------------------------------------------------------
def _conv2d_nchw(x, w, b, *, groups=1, pad_h=0, pad_w=0):
    out = lax.conv_general_dilated(
        x, w, window_strides=(1, 1),
        padding=((pad_h, pad_h), (pad_w, pad_w)),
        dimension_numbers=("NCHW", "OIHW", "NCHW"),
        feature_group_count=groups,
        precision=lax.Precision.HIGHEST)
    return out + b[None, :, None, None]


def _conv1d_ncl(x, w, b, *, groups=1, pad=0):
    out = _conv2d_nchw(x[:, :, None, :], w[:, :, None, :], b,
                       groups=groups, pad_h=0, pad_w=pad)
    return out[:, :, 0, :]


def _bilinear_align_corners(img, out_h, out_w):
    """torch F.interpolate(mode='bilinear', align_corners=True) on last 2 dims."""
    in_h, in_w = img.shape[-2], img.shape[-1]

    def src_coords(out_n, in_n):
        if out_n <= 1 or in_n <= 1:
            return jnp.zeros((out_n,), jnp.float32)
        return jnp.arange(out_n, dtype=jnp.float32) * ((in_n - 1) / (out_n - 1))

    ys = src_coords(out_h, in_h)
    xs = src_coords(out_w, in_w)
    y0 = jnp.floor(ys).astype(jnp.int32)
    y1 = jnp.minimum(y0 + 1, in_h - 1)
    wy = ys - y0.astype(jnp.float32)
    x0 = jnp.floor(xs).astype(jnp.int32)
    x1 = jnp.minimum(x0 + 1, in_w - 1)
    wx = xs - x0.astype(jnp.float32)

    top = jnp.take(img, y0, axis=-2)
    bot = jnp.take(img, y1, axis=-2)
    v = top * (1.0 - wy)[:, None] + bot * wy[:, None]
    left = jnp.take(v, x0, axis=-1)
    right = jnp.take(v, x1, axis=-1)
    return left * (1.0 - wx) + right * wx


def _attention_maps(p, H, W):
    """Batch-independent parameter branches: interpolation + tiny conv stacks."""
    C = p["params_xy"].shape[1]

    # xy branch: (1,C,x,y) -> (1,C,H,W) -> dw3x3 -> GELU -> 1x1
    pxy = _bilinear_align_corners(p["params_xy"], H, W)
    axy = _conv2d_nchw(pxy, p["xy_dw_w"], p["xy_dw_b"], groups=C, pad_h=1, pad_w=1)
    axy = _conv2d_nchw(_gelu_exact(axy), p["xy_pw_w"], p["xy_pw_b"])
    att_xy = axy[0]                                                   # (C, H, W)

    # zx branch: (1,1,C,x) -> (1,1,C,H) -> squeeze -> conv1d stack over length H
    pzx = _bilinear_align_corners(p["params_zx"], C, H)[0]            # (1, C, H)
    azx = _conv1d_ncl(pzx, p["zx_dw_w"], p["zx_dw_b"], groups=C, pad=1)
    azx = _conv1d_ncl(_gelu_exact(azx), p["zx_pw_w"], p["zx_pw_b"])
    att_zx = azx[0]                                                   # (C, H)

    # zy branch: (1,1,C,y) -> (1,1,C,W) -> squeeze -> conv1d stack over length W
    pzy = _bilinear_align_corners(p["params_zy"], C, W)[0]            # (1, C, W)
    azy = _conv1d_ncl(pzy, p["zy_dw_w"], p["zy_dw_b"], groups=C, pad=1)
    azy = _conv1d_ncl(_gelu_exact(azy), p["zy_pw_w"], p["zy_pw_b"])
    att_zy = azy[0]                                                   # (C, W)
    return att_xy, att_zx, att_zy


# ---------------------------------------------------------------------------
# Pallas kernel: one batch element per grid step, fused (4C, HWp) channel slab.
# ---------------------------------------------------------------------------
def _make_ghpa_kernel(H, W, HWp, C, Cout):
    Cin = 4 * C
    inv_cin = 1.0 / Cin

    def kernel(xg_ref, amap_ref, coords_ref,
               n1w_ref, n1b_ref,
               dw1w_ref, dw1b_ref, dw2w_ref, dw2b_ref,
               n2w_ref, n2b_ref,
               l1w_ref, l1b_ref, l2w_ref, l2b_ref,
               o_ref, cat_ref):
        # ---- 3x3 zero-pad validity masks, built once from (row, col) coords.
        hh = coords_ref[0:1, :]                              # (1, HWp) int32
        ww = coords_ref[1:2, :]
        row_ok = {-1: hh >= 1, 0: None, 1: hh <= H - 2}
        col_ok = {-1: ww >= 1, 0: None, 1: ww <= W - 2}
        masks = {}
        for j in range(9):
            if j == 4:
                continue
            r, c = row_ok[j // 3 - 1], col_ok[j % 3 - 1]
            masks[j] = r if c is None else (c if r is None else
                                            jnp.logical_and(r, c))

        def dw3x3(x, w9, b1):
            # Depthwise 3x3 "same" conv on (R, HWp): XLU lane rolls in
            # flattened H*W space + edge masks; center tap fused with bias.
            acc = x * w9[:, 4:5] + b1
            for j in range(9):
                if j == 4:
                    continue
                dh, dw = j // 3 - 1, j % 3 - 1
                s = dh * W + dw
                rolled = pltpu.roll(x, shift=(-s) % HWp, axis=1)
                rolled = jnp.where(masks[j], rolled, 0.0)
                acc = acc + rolled * w9[:, j:j + 1]
            return acc

        def layernorm(v, w, b):
            # channels_first LayerNorm over the full 4C rows in ONE pass
            # (sum / sum-of-squares together), biased variance.
            s1 = jnp.sum(v, axis=0, keepdims=True)
            s2 = jnp.sum(v * v, axis=0, keepdims=True)
            mean = s1 * inv_cin
            var = s2 * inv_cin - mean * mean
            inv = lax.rsqrt(var + _EPS)                      # EUP rsqrt
            return (v - mean) * inv * w + b

        x = xg_ref[0]                                        # (4C, HWp)
        xn = layernorm(x, n1w_ref[...], n1b_ref[...])

        # Grouped multi-axis Hadamard products as ONE full-slab multiply
        # (map rows 3C:4C are ones; group 4 gets overwritten just below).
        cat_ref[...] = xn * amap_ref[...]

        # dw branch on group 4: 1x1 (MXU; weight zero-padded to (C, 4C) so the
        # whole normalized slab is contracted - no sublane slicing of xn),
        # then GELU, then depthwise 3x3 on only C rows.
        x4 = jnp.dot(dw1w_ref[...], xn,
                     preferred_element_type=jnp.float32) + dw1b_ref[...]
        x4 = _gelu_in_kernel(x4)
        x4 = dw3x3(x4, dw2w_ref[...], dw2b_ref[...])
        cat_ref[3 * C:4 * C, :] = x4                         # concat via scratch

        xcat = cat_ref[...]
        ycat = layernorm(xcat, n2w_ref[...], n2b_ref[...])

        # ldw head fused over the whole slab: one depthwise 3x3 (8 rolls),
        # one GELU, one (Cout, 4C) @ (4C, HWp) MXU matmul.
        t = _gelu_in_kernel(dw3x3(ycat, l1w_ref[...], l1b_ref[...]))
        out = jnp.dot(l2w_ref[...], t,
                      preferred_element_type=jnp.float32) + l2b_ref[...]
        o_ref[0] = out.astype(o_ref.dtype)

    return kernel


# ---------------------------------------------------------------------------
# Wrapper: NCHW in / NCHW out, parameter re-layout, pallas_call
# ---------------------------------------------------------------------------
@jax.jit
def ghpa_forward_pallas(x_nchw, params):
    B, Cin, H, W = x_nchw.shape
    C = Cin // 4
    HW = H * W
    HWp = ((HW + 127) // 128) * 128            # lane-dense spatial axis
    pad = HWp - HW
    Cout = params["ldw_pw_w"].shape[0]

    att_xy, att_zx, att_zy = _attention_maps(params, H, W)

    # Fused (4C, HW) Hadamard slab: [xy | zx (bcast over w) | zy (bcast over h) | 1].
    # TODO(synk): for very large H*W feed zx/zy compact ((C,H)/(C,W)) in bf16
    # and expand in-kernel instead of pre-broadcasting here.
    amap = jnp.concatenate([
        att_xy.reshape(C, HW),
        jnp.broadcast_to(att_zx[:, :, None], (C, H, W)).reshape(C, HW),
        jnp.broadcast_to(att_zy[:, None, :], (C, H, W)).reshape(C, HW),
        jnp.ones((C, HW), jnp.float32),
    ], axis=0).astype(jnp.float32)

    xg = x_nchw.reshape(B, Cin, HW).astype(jnp.float32)
    if pad:
        xg = jnp.pad(xg, ((0, 0), (0, 0), (0, pad)))
        amap = jnp.pad(amap, ((0, 0), (0, pad)))

    # (row, col) of every flattened lane position: the kernel derives the
    # 3x3 zero-pad tap masks from 4 compares on these (replaces the old
    # (9, HW) f32 mask input).  Pad lanes never feed valid outputs.
    idx = np.arange(HWp, dtype=np.int64)
    coords = jnp.asarray(np.stack([idx // W, idx % W]).astype(np.int32))  # (2,HWp)

    p = params
    n1w = p["norm1_w"].reshape(Cin, 1)
    n1b = p["norm1_b"].reshape(Cin, 1)
    n2w = p["norm2_w"].reshape(Cin, 1)
    n2b = p["norm2_b"].reshape(Cin, 1)
    # dw-branch 1x1 embedded as (C, 4C): only the last C input columns nonzero.
    dw1w = jnp.concatenate(
        [jnp.zeros((C, 3 * C), jnp.float32), p["dw_pw_w"][:, :, 0, 0]], axis=1)
    dw1b = p["dw_pw_b"].reshape(C, 1)
    dw2w = p["dw_dw_w"][:, 0].reshape(C, 9)                  # tap j = ki*3 + kj
    dw2b = p["dw_dw_b"].reshape(C, 1)
    l1w = p["ldw_dw_w"][:, 0].reshape(Cin, 9)                # fused (4C, 9)
    l1b = p["ldw_dw_b"].reshape(Cin, 1)
    l2w = p["ldw_pw_w"][:, :, 0, 0]                          # (Cout, 4C)
    l2b = p["ldw_pw_b"].reshape(Cout, 1)

    def _const_spec(shape):
        nd = len(shape)
        return pl.BlockSpec(shape, lambda b, _nd=nd: (0,) * _nd)

    in_block_shapes = [
        (1, Cin, HWp),                    # x
        (Cin, HWp),                       # Hadamard slab
        (2, HWp),                         # coords
        (Cin, 1), (Cin, 1),               # norm1 w/b
        (C, Cin), (C, 1),                 # dw 1x1 (embedded) w/b
        (C, 9), (C, 1),                   # dw depthwise w/b
        (Cin, 1), (Cin, 1),               # norm2 w/b
        (Cin, 9), (Cin, 1),               # ldw depthwise (fused) w/b
        (Cout, Cin), (Cout, 1),           # ldw 1x1 w/b
    ]
    in_specs = ([pl.BlockSpec((1, Cin, HWp), lambda b: (b, 0, 0))]
                + [_const_spec(s) for s in in_block_shapes[1:]])

    grid_spec = pltpu.PrefetchScalarGridSpec(
        num_scalar_prefetch=0,
        grid=(B,),
        in_specs=in_specs,
        out_specs=pl.BlockSpec((1, Cout, HWp), lambda b: (b, 0, 0)),
        scratch_shapes=[pltpu.VMEM((Cin, HWp), jnp.float32)],   # concat slab
    )

    # Generation-aware VMEM budget, derived per BlockSpec (x2 for default
    # double buffering) + scratch + live slab intermediates.
    def _nbytes(shape, itemsize=4):
        n = 1
        for d in shape:
            n *= d
        return n * itemsize

    try:
        vmem_cap = int(getattr(pltpu.get_tpu_info(), "vmem_capacity_bytes",
                               64 * 1024 * 1024))
    except Exception:
        vmem_cap = 64 * 1024 * 1024
    vmem_est = (2 * sum(_nbytes(s) for s in in_block_shapes)
                + 2 * _nbytes((1, Cout, HWp))
                + _nbytes((Cin, HWp))                # cat scratch
                + 8 * _nbytes((Cin, HWp))            # live slab intermediates
                + (2 << 20))
    vmem_limit = int(min(max(vmem_est, 16 * 1024 * 1024), int(vmem_cap * 0.85)))

    y_flat = pl.pallas_call(
        _make_ghpa_kernel(H, W, HWp, C, Cout),
        out_shape=jax.ShapeDtypeStruct((B, Cout, HWp), jnp.float32),
        grid_spec=grid_spec,
        compiler_params=pltpu.CompilerParams(
            dimension_semantics=("parallel",),
            vmem_limit_bytes=vmem_limit),
    )(xg, amap, coords, n1w, n1b, dw1w, dw1b, dw2w, dw2b,
      n2w, n2b, l1w, l1b, l2w, l2b)

    return y_flat[:, :, :HW].reshape(B, Cout, H, W)          # NCHW


# ---------------------------------------------------------------------------
# Pure-JAX reference (mirrors the PyTorch forward, NCHW) for verification.
# ---------------------------------------------------------------------------
@jax.jit
def ghpa_forward_reference(x, p):
    B, Cin, H, W = x.shape
    C = Cin // 4

    def ln_channels_first(v, w, b):
        u = v.mean(axis=1, keepdims=True)
        s = ((v - u) ** 2).mean(axis=1, keepdims=True)
        vn = (v - u) / jnp.sqrt(s + _EPS)
        return w[None, :, None, None] * vn + b[None, :, None, None]

    att_xy, att_zx, att_zy = _attention_maps(p, H, W)

    xn = ln_channels_first(x, p["norm1_w"], p["norm1_b"])
    x1 = xn[:, 0 * C:1 * C] * att_xy[None]
    x2 = xn[:, 1 * C:2 * C] * att_zx[None, :, :, None]
    x3 = xn[:, 2 * C:3 * C] * att_zy[None, :, None, :]
    x4 = xn[:, 3 * C:4 * C]
    x4 = _conv2d_nchw(x4, p["dw_pw_w"], p["dw_pw_b"])
    x4 = _gelu_exact(x4)
    x4 = _conv2d_nchw(x4, p["dw_dw_w"], p["dw_dw_b"], groups=C, pad_h=1, pad_w=1)

    xc = jnp.concatenate([x1, x2, x3, x4], axis=1)
    xc = ln_channels_first(xc, p["norm2_w"], p["norm2_b"])
    y = _conv2d_nchw(xc, p["ldw_dw_w"], p["ldw_dw_b"], groups=Cin, pad_h=1, pad_w=1)
    y = _gelu_exact(y)
    y = _conv2d_nchw(y, p["ldw_pw_w"], p["ldw_pw_b"])
    return y


# ---------------------------------------------------------------------------
# Deterministic parameter init (shapes from the module's __init__)
# ---------------------------------------------------------------------------
def init_params(key, dim_in, dim_out, gx, gy):
    C = dim_in // 4
    keys = iter(jax.random.split(key, 40))

    def rnd(shape, scale):
        return scale * jax.random.normal(next(keys), shape, jnp.float32)

    # NOTE: the PyTorch module inits params_xy/zx/zy to ones; noise is added
    # so the bilinear-interpolation path is exercised non-trivially.
    return {
        "params_xy": 1.0 + rnd((1, C, gx, gy), 0.3),
        "xy_dw_w": rnd((C, 1, 3, 3), 0.2), "xy_dw_b": rnd((C,), 0.1),
        "xy_pw_w": rnd((C, C, 1, 1), 0.2), "xy_pw_b": rnd((C,), 0.1),
        "params_zx": 1.0 + rnd((1, 1, C, gx), 0.3),
        "zx_dw_w": rnd((C, 1, 3), 0.2), "zx_dw_b": rnd((C,), 0.1),
        "zx_pw_w": rnd((C, C, 1), 0.2), "zx_pw_b": rnd((C,), 0.1),
        "params_zy": 1.0 + rnd((1, 1, C, gy), 0.3),
        "zy_dw_w": rnd((C, 1, 3), 0.2), "zy_dw_b": rnd((C,), 0.1),
        "zy_pw_w": rnd((C, C, 1), 0.2), "zy_pw_b": rnd((C,), 0.1),
        "dw_pw_w": rnd((C, C, 1, 1), 0.2), "dw_pw_b": rnd((C,), 0.1),
        "dw_dw_w": rnd((C, 1, 3, 3), 0.2), "dw_dw_b": rnd((C,), 0.1),
        "norm1_w": 1.0 + rnd((dim_in,), 0.1), "norm1_b": rnd((dim_in,), 0.1),
        "norm2_w": 1.0 + rnd((dim_in,), 0.1), "norm2_b": rnd((dim_in,), 0.1),
        "ldw_dw_w": rnd((dim_in, 1, 3, 3), 0.2), "ldw_dw_b": rnd((dim_in,), 0.1),
        "ldw_pw_w": rnd((dim_out, dim_in, 1, 1), 0.2),
        "ldw_pw_b": rnd((dim_out,), 0.1),
    }


if __name__ == "__main__":
    key = jax.random.PRNGKey(0)
    B, dim_in, dim_out, H, W = 2, 16, 8, 16, 16

    pkey, xkey = jax.random.split(key)
    params = init_params(pkey, dim_in, dim_out, 8, 8)
    x = jax.random.normal(xkey, (B, dim_in, H, W), jnp.float32)

    y_kernel = jax.block_until_ready(ghpa_forward_pallas(x, params))
    y_ref = jax.block_until_ready(ghpa_forward_reference(x, params))

    assert y_kernel.shape == (B, dim_out, H, W), y_kernel.shape
    # Tolerance covers default-precision (single-pass bf16) MXU 1x1s in the
    # kernel vs the f32-exact reference, plus the approx-reciprocal / erf
    # polynomial in the in-kernel GELU (per the performance review).
    diff = jnp.abs(y_kernel - y_ref)
    tol = 5e-3 + 2e-2 * jnp.abs(y_ref)
    if not bool(jnp.all(diff <= tol)):
        raise AssertionError(
            f"Pallas kernel mismatch vs reference: max|diff|="
            f"{float(jnp.max(diff)):.3e}")
    print("KERNEL_OK")
</pallas_src>

<mosaic_0001>
module attributes {stable_mosaic.version = 11 : i64} {
  func.func @kernel(%arg0: i32, %arg1: memref<1x16x256xf32, #tpu.memory_space<vmem>>, %arg2: memref<16x256xf32, #tpu.memory_space<vmem>>, %arg3: memref<2x256xi32, #tpu.memory_space<vmem>>, %arg4: memref<16x1xf32, #tpu.memory_space<vmem>>, %arg5: memref<16x1xf32, #tpu.memory_space<vmem>>, %arg6: memref<4x16xf32, #tpu.memory_space<vmem>>, %arg7: memref<4x1xf32, #tpu.memory_space<vmem>>, %arg8: memref<4x9xf32, #tpu.memory_space<vmem>>, %arg9: memref<4x1xf32, #tpu.memory_space<vmem>>, %arg10: memref<16x1xf32, #tpu.memory_space<vmem>>, %arg11: memref<16x1xf32, #tpu.memory_space<vmem>>, %arg12: memref<16x9xf32, #tpu.memory_space<vmem>>, %arg13: memref<16x1xf32, #tpu.memory_space<vmem>>, %arg14: memref<8x16xf32, #tpu.memory_space<vmem>>, %arg15: memref<8x1xf32, #tpu.memory_space<vmem>>, %arg16: memref<1x8x256xf32, #tpu.memory_space<vmem>>, %arg17: memref<16x256xf32, #tpu.memory_space<vmem>>) attributes {dimension_semantics = [#tpu.dimension_semantics<parallel>], iteration_bounds = array<i64: 2>, scalar_prefetch = 0 : i64, scratch_operands = 1 : i64, tpu.core_type = #tpu.core_type<tc>, window_params = [{transform_indices = @transform_0, window_bounds = array<i64: 1, 16, 256>}, {pipeline_mode = #tpu.pipeline_mode<synchronous>, transform_indices = @transform_1, window_bounds = array<i64: 16, 256>}, {pipeline_mode = #tpu.pipeline_mode<synchronous>, transform_indices = @transform_2, window_bounds = array<i64: 2, 256>}, {pipeline_mode = #tpu.pipeline_mode<synchronous>, transform_indices = @transform_3, window_bounds = array<i64: 16, 1>}, {pipeline_mode = #tpu.pipeline_mode<synchronous>, transform_indices = @transform_4, window_bounds = array<i64: 16, 1>}, {pipeline_mode = #tpu.pipeline_mode<synchronous>, transform_indices = @transform_5, window_bounds = array<i64: 4, 16>}, {pipeline_mode = #tpu.pipeline_mode<synchronous>, transform_indices = @transform_6, window_bounds = array<i64: 4, 1>}, {pipeline_mode = #tpu.pipeline_mode<synchronous>, transform_indices = @transform_7, window_bounds = array<i64: 4, 9>}, {pipeline_mode = #tpu.pipeline_mode<synchronous>, transform_indices = @transform_8, window_bounds = array<i64: 4, 1>}, {pipeline_mode = #tpu.pipeline_mode<synchronous>, transform_indices = @transform_9, window_bounds = array<i64: 16, 1>}, {pipeline_mode = #tpu.pipeline_mode<synchronous>, transform_indices = @transform_10, window_bounds = array<i64: 16, 1>}, {pipeline_mode = #tpu.pipeline_mode<synchronous>, transform_indices = @transform_11, window_bounds = array<i64: 16, 9>}, {pipeline_mode = #tpu.pipeline_mode<synchronous>, transform_indices = @transform_12, window_bounds = array<i64: 16, 1>}, {pipeline_mode = #tpu.pipeline_mode<synchronous>, transform_indices = @transform_13, window_bounds = array<i64: 8, 16>}, {pipeline_mode = #tpu.pipeline_mode<synchronous>, transform_indices = @transform_14, window_bounds = array<i64: 8, 1>}, {transform_indices = @transform_15, window_bounds = array<i64: 1, 8, 256>}]} {
    %c0 = arith.constant 0 : index
    %c0_0 = arith.constant 0 : index
    %0 = vector.load %arg3[%c0, %c0_0] : memref<2x256xi32, #tpu.memory_space<vmem>>, vector<1x256xi32>
    %c1 = arith.constant 1 : index
    %c0_1 = arith.constant 0 : index
    %1 = vector.load %arg3[%c1, %c0_1] : memref<2x256xi32, #tpu.memory_space<vmem>>, vector<1x256xi32>
    %c1_i32 = arith.constant 1 : i32
    %2 = vector.broadcast %c1_i32 : i32 to vector<1x256xi32>
    %3 = arith.cmpi sge, %0, %2 : vector<1x256xi32>
    %c14_i32 = arith.constant 14 : i32
    %4 = vector.broadcast %c14_i32 : i32 to vector<1x256xi32>
    %5 = arith.cmpi sle, %0, %4 : vector<1x256xi32>
    %c1_i32_2 = arith.constant 1 : i32
    %6 = vector.broadcast %c1_i32_2 : i32 to vector<1x256xi32>
    %7 = arith.cmpi sge, %1, %6 : vector<1x256xi32>
    %c14_i32_3 = arith.constant 14 : i32
    %8 = vector.broadcast %c14_i32_3 : i32 to vector<1x256xi32>
    %9 = arith.cmpi sle, %1, %8 : vector<1x256xi32>
    %10 = arith.andi %3, %7 : vector<1x256xi1>
    %11 = arith.andi %3, %9 : vector<1x256xi1>
    %12 = arith.andi %5, %7 : vector<1x256xi1>
    %13 = arith.andi %5, %9 : vector<1x256xi1>
    %c0_4 = arith.constant 0 : index
    %c0_5 = arith.constant 0 : index
    %c0_6 = arith.constant 0 : index
    %14 = vector.load %arg1[%c0_4, %c0_5, %c0_6] : memref<1x16x256xf32, #tpu.memory_space<vmem>>, vector<1x16x256xf32>
    %15 = vector.shape_cast %14 : vector<1x16x256xf32> to vector<16x256xf32>
    %c0_7 = arith.constant 0 : index
    %c0_8 = arith.constant 0 : index
    %16 = vector.load %arg4[%c0_7, %c0_8] : memref<16x1xf32, #tpu.memory_space<vmem>>, vector<16x1xf32>
    %c0_9 = arith.constant 0 : index
    %c0_10 = arith.constant 0 : index
    %17 = vector.load %arg5[%c0_9, %c0_10] : memref<16x1xf32, #tpu.memory_space<vmem>>, vector<16x1xf32>
    %cst = arith.constant dense<0.000000e+00> : vector<256xf32>
    %18 = vector.multi_reduction <add>, %15, %cst [0] : vector<16x256xf32> to vector<256xf32>
    %19 = vector.shape_cast %18 : vector<256xf32> to vector<1x256xf32>
    %20 = arith.mulf %15, %15 : vector<16x256xf32>
    %cst_11 = arith.constant dense<0.000000e+00> : vector<256xf32>
    %21 = vector.multi_reduction <add>, %20, %cst_11 [0] : vector<16x256xf32> to vector<256xf32>
    %22 = vector.shape_cast %21 : vector<256xf32> to vector<1x256xf32>
    %cst_12 = arith.constant 6.250000e-02 : f32
    %23 = vector.broadcast %cst_12 : f32 to vector<1x256xf32>
    %24 = arith.mulf %19, %23 : vector<1x256xf32>
    %cst_13 = arith.constant 6.250000e-02 : f32
    %25 = vector.broadcast %cst_13 : f32 to vector<1x256xf32>
    %26 = arith.mulf %22, %25 : vector<1x256xf32>
    %27 = arith.mulf %24, %24 : vector<1x256xf32>
    %28 = arith.subf %26, %27 : vector<1x256xf32>
    %cst_14 = arith.constant 9.99999997E-7 : f32
    %29 = vector.broadcast %cst_14 : f32 to vector<1x256xf32>
    %30 = arith.addf %28, %29 : vector<1x256xf32>
    %31 = math.rsqrt %30 : vector<1x256xf32>
    %32 = vector.broadcast %24 : vector<1x256xf32> to vector<16x256xf32>
    %33 = arith.subf %15, %32 : vector<16x256xf32>
    %34 = vector.broadcast %31 : vector<1x256xf32> to vector<16x256xf32>
    %35 = arith.mulf %33, %34 : vector<16x256xf32>
    %36 = vector.broadcast %16 : vector<16x1xf32> to vector<16x256xf32>
    %37 = arith.mulf %35, %36 : vector<16x256xf32>
    %38 = vector.broadcast %17 : vector<16x1xf32> to vector<16x256xf32>
    %39 = arith.addf %37, %38 : vector<16x256xf32>
    %c0_15 = arith.constant 0 : index
    %c0_16 = arith.constant 0 : index
    %40 = vector.load %arg2[%c0_15, %c0_16] : memref<16x256xf32, #tpu.memory_space<vmem>>, vector<16x256xf32>
    %41 = arith.mulf %39, %40 : vector<16x256xf32>
    %c0_17 = arith.constant 0 : index
    %c0_18 = arith.constant 0 : index
    %42 = vector.load %arg17[%c0_17, %c0_18] : memref<16x256xf32, #tpu.memory_space<vmem>>, vector<16x256xf32>
    tpu.vector_store %arg17[%c0_17, %c0_18], %41 {strides = array<i32>} : memref<16x256xf32, #tpu.memory_space<vmem>>, vector<16x256xf32>,
    %c0_19 = arith.constant 0 : index
    %c0_20 = arith.constant 0 : index
    %43 = vector.load %arg6[%c0_19, %c0_20] : memref<4x16xf32, #tpu.memory_space<vmem>>, vector<4x16xf32>
    %cst_21 = arith.constant dense<0.000000e+00> : vector<4x256xf32>
    %44 = tpu.matmul %43, %39, %cst_21 {dimension_numbers = #tpu.dot_dimension_numbers<[1], [0], [0], [1], [0, 0, 1, 1], [], []>} : vector<4x16xf32>, vector<16x256xf32>, vector<4x256xf32> -> vector<4x256xf32>
    %c0_22 = arith.constant 0 : index
    %c0_23 = arith.constant 0 : index
    %45 = vector.load %arg7[%c0_22, %c0_23] : memref<4x1xf32, #tpu.memory_space<vmem>>, vector<4x1xf32>
    %46 = vector.broadcast %45 : vector<4x1xf32> to vector<4x256xf32>
    %47 = arith.addf %44, %46 : vector<4x256xf32>
    %cst_24 = arith.constant 0.707106769 : f32
    %48 = vector.broadcast %cst_24 : f32 to vector<4x256xf32>
    %49 = arith.mulf %47, %48 : vector<4x256xf32>
    %50 = math.absf %49 : vector<4x256xf32>
    %cst_25 = arith.constant 0.327591091 : f32
    %51 = vector.broadcast %cst_25 : f32 to vector<4x256xf32>
    %52 = arith.mulf %51, %50 : vector<4x256xf32>
    %cst_26 = arith.constant 1.000000e+00 : f32
    %53 = vector.broadcast %cst_26 : f32 to vector<4x256xf32>
    %54 = arith.addf %53, %52 : vector<4x256xf32>
    %55 = tpu.reciprocal %54 {approx = true} : vector<4x256xf32> -> vector<4x256xf32>
    %cst_27 = arith.constant 1.06140542 : f32
    %56 = vector.broadcast %cst_27 : f32 to vector<4x256xf32>
    %57 = arith.mulf %56, %55 : vector<4x256xf32>
    %cst_28 = arith.constant -1.45315206 : f32
    %58 = vector.broadcast %cst_28 : f32 to vector<4x256xf32>
    %59 = arith.addf %57, %58 : vector<4x256xf32>
    %60 = arith.mulf %59, %55 : vector<4x256xf32>
    %cst_29 = arith.constant 1.42141378 : f32
    %61 = vector.broadcast %cst_29 : f32 to vector<4x256xf32>
    %62 = arith.addf %60, %61 : vector<4x256xf32>
    %63 = arith.mulf %62, %55 : vector<4x256xf32>
    %cst_30 = arith.constant -0.284496725 : f32
    %64 = vector.broadcast %cst_30 : f32 to vector<4x256xf32>
    %65 = arith.addf %63, %64 : vector<4x256xf32>
    %66 = arith.mulf %65, %55 : vector<4x256xf32>
    %cst_31 = arith.constant 0.254829586 : f32
    %67 = vector.broadcast %cst_31 : f32 to vector<4x256xf32>
    %68 = arith.addf %66, %67 : vector<4x256xf32>
    %69 = arith.mulf %68, %55 : vector<4x256xf32>
    %cst_32 = arith.constant 0.000000e+00 : f32
    %70 = vector.broadcast %cst_32 : f32 to vector<4x256xf32>
    %71 = arith.subf %70, %50 : vector<4x256xf32>
    %72 = arith.mulf %71, %50 : vector<4x256xf32>
    %73 = math.exp %72 : vector<4x256xf32>
    %74 = arith.mulf %69, %73 : vector<4x256xf32>
    %cst_33 = arith.constant 1.000000e+00 : f32
    %75 = vector.broadcast %cst_33 : f32 to vector<4x256xf32>
    %76 = arith.subf %75, %74 : vector<4x256xf32>
    %cst_34 = arith.constant 0.000000e+00 : f32
    %77 = vector.broadcast %cst_34 : f32 to vector<4x256xf32>
    %78 = arith.cmpf oge, %49, %77 : vector<4x256xf32>
    %cst_35 = arith.constant 0.000000e+00 : f32
    %79 = vector.broadcast %cst_35 : f32 to vector<4x256xf32>
    %80 = arith.subf %79, %76 : vector<4x256xf32>
    %81 = arith.select %78, %76, %80 : vector<4x256xi1>, vector<4x256xf32>
    %cst_36 = arith.constant 5.000000e-01 : f32
    %82 = vector.broadcast %cst_36 : f32 to vector<4x256xf32>
    %83 = arith.mulf %82, %47 : vector<4x256xf32>
    %cst_37 = arith.constant 1.000000e+00 : f32
    %84 = vector.broadcast %cst_37 : f32 to vector<4x256xf32>
    %85 = arith.addf %84, %81 : vector<4x256xf32>
    %86 = arith.mulf %83, %85 : vector<4x256xf32>
    %c0_38 = arith.constant 0 : index
    %c0_39 = arith.constant 0 : index
    %87 = vector.load %arg8[%c0_38, %c0_39] : memref<4x9xf32, #tpu.memory_space<vmem>>, vector<4x9xf32>
    %c0_40 = arith.constant 0 : index
    %c0_41 = arith.constant 0 : index
    %88 = vector.load %arg9[%c0_40, %c0_41] : memref<4x1xf32, #tpu.memory_space<vmem>>, vector<4x1xf32>
    %89 = vector.extract_strided_slice %87 {offsets = [0, 4], sizes = [4, 1], strides = [1, 1]} : vector<4x9xf32> to vector<4x1xf32>
    %90 = vector.broadcast %89 : vector<4x1xf32> to vector<4x256xf32>
    %91 = arith.mulf %86, %90 : vector<4x256xf32>
    %92 = vector.broadcast %88 : vector<4x1xf32> to vector<4x256xf32>
    %93 = arith.addf %91, %92 : vector<4x256xf32>
    %c17_i32 = arith.constant 17 : i32
    %94 = tpu.dynamic_rotate %86 by %c17_i32 dim 1 : vector<4x256xf32>, i32 -> vector<4x256xf32>
    %cst_42 = arith.constant 0.000000e+00 : f32
    %95 = vector.shape_cast %10 : vector<1x256xi1> to vector<1x256xi1>
    %96 = vector.broadcast %95 : vector<1x256xi1> to vector<4x256xi1>
    %97 = vector.broadcast %cst_42 : f32 to vector<4x256xf32>
    %98 = arith.select %96, %94, %97 : vector<4x256xi1>, vector<4x256xf32>
    %99 = vector.extract_strided_slice %87 {offsets = [0, 0], sizes = [4, 1], strides = [1, 1]} : vector<4x9xf32> to vector<4x1xf32>
    %100 = vector.broadcast %99 : vector<4x1xf32> to vector<4x256xf32>
    %101 = arith.mulf %98, %100 : vector<4x256xf32>
    %102 = arith.addf %93, %101 : vector<4x256xf32>
    %c16_i32 = arith.constant 16 : i32
    %103 = tpu.dynamic_rotate %86 by %c16_i32 dim 1 : vector<4x256xf32>, i32 -> vector<4x256xf32>
    %cst_43 = arith.constant 0.000000e+00 : f32
    %104 = vector.shape_cast %3 : vector<1x256xi1> to vector<1x256xi1>
    %105 = vector.broadcast %104 : vector<1x256xi1> to vector<4x256xi1>
    %106 = vector.broadcast %cst_43 : f32 to vector<4x256xf32>
    %107 = arith.select %105, %103, %106 : vector<4x256xi1>, vector<4x256xf32>
    %108 = vector.extract_strided_slice %87 {offsets = [0, 1], sizes = [4, 1], strides = [1, 1]} : vector<4x9xf32> to vector<4x1xf32>
    %109 = vector.broadcast %108 : vector<4x1xf32> to vector<4x256xf32>
    %110 = arith.mulf %107, %109 : vector<4x256xf32>
    %111 = arith.addf %102, %110 : vector<4x256xf32>
    %c15_i32 = arith.constant 15 : i32
    %112 = tpu.dynamic_rotate %86 by %c15_i32 dim 1 : vector<4x256xf32>, i32 -> vector<4x256xf32>
    %cst_44 = arith.constant 0.000000e+00 : f32
    %113 = vector.shape_cast %11 : vector<1x256xi1> to vector<1x256xi1>
    %114 = vector.broadcast %113 : vector<1x256xi1> to vector<4x256xi1>
    %115 = vector.broadcast %cst_44 : f32 to vector<4x256xf32>
    %116 = arith.select %114, %112, %115 : vector<4x256xi1>, vector<4x256xf32>
    %117 = vector.extract_strided_slice %87 {offsets = [0, 2], sizes = [4, 1], strides = [1, 1]} : vector<4x9xf32> to vector<4x1xf32>
    %118 = vector.broadcast %117 : vector<4x1xf32> to vector<4x256xf32>
    %119 = arith.mulf %116, %118 : vector<4x256xf32>
    %120 = arith.addf %111, %119 : vector<4x256xf32>
    %c1_i32_45 = arith.constant 1 : i32
    %121 = tpu.dynamic_rotate %86 by %c1_i32_45 dim 1 : vector<4x256xf32>, i32 -> vector<4x256xf32>
    %cst_46 = arith.constant 0.000000e+00 : f32
    %122 = vector.shape_cast %7 : vector<1x256xi1> to vector<1x256xi1>
    %123 = vector.broadcast %122 : vector<1x256xi1> to vector<4x256xi1>
    %124 = vector.broadcast %cst_46 : f32 to vector<4x256xf32>
    %125 = arith.select %123, %121, %124 : vector<4x256xi1>, vector<4x256xf32>
    %126 = vector.extract_strided_slice %87 {offsets = [0, 3], sizes = [4, 1], strides = [1, 1]} : vector<4x9xf32> to vector<4x1xf32>
    %127 = vector.broadcast %126 : vector<4x1xf32> to vector<4x256xf32>
    %128 = arith.mulf %125, %127 : vector<4x256xf32>
    %129 = arith.addf %120, %128 : vector<4x256xf32>
    %c255_i32 = arith.constant 255 : i32
    %130 = tpu.dynamic_rotate %86 by %c255_i32 dim 1 : vector<4x256xf32>, i32 -> vector<4x256xf32>
    %cst_47 = arith.constant 0.000000e+00 : f32
    %131 = vector.shape_cast %9 : vector<1x256xi1> to vector<1x256xi1>
    %132 = vector.broadcast %131 : vector<1x256xi1> to vector<4x256xi1>
    %133 = vector.broadcast %cst_47 : f32 to vector<4x256xf32>
    %134 = arith.select %132, %130, %133 : vector<4x256xi1>, vector<4x256xf32>
    %135 = vector.extract_strided_slice %87 {offsets = [0, 5], sizes = [4, 1], strides = [1, 1]} : vector<4x9xf32> to vector<4x1xf32>
    %136 = vector.broadcast %135 : vector<4x1xf32> to vector<4x256xf32>
    %137 = arith.mulf %134, %136 : vector<4x256xf32>
    %138 = arith.addf %129, %137 : vector<4x256xf32>
    %c241_i32 = arith.constant 241 : i32
    %139 = tpu.dynamic_rotate %86 by %c241_i32 dim 1 : vector<4x256xf32>, i32 -> vector<4x256xf32>
    %cst_48 = arith.constant 0.000000e+00 : f32
    %140 = vector.shape_cast %12 : vector<1x256xi1> to vector<1x256xi1>
    %141 = vector.broadcast %140 : vector<1x256xi1> to vector<4x256xi1>
    %142 = vector.broadcast %cst_48 : f32 to vector<4x256xf32>
    %143 = arith.select %141, %139, %142 : vector<4x256xi1>, vector<4x256xf32>
    %144 = vector.extract_strided_slice %87 {offsets = [0, 6], sizes = [4, 1], strides = [1, 1]} : vector<4x9xf32> to vector<4x1xf32>
    %145 = vector.broadcast %144 : vector<4x1xf32> to vector<4x256xf32>
    %146 = arith.mulf %143, %145 : vector<4x256xf32>
    %147 = arith.addf %138, %146 : vector<4x256xf32>
    %c240_i32 = arith.constant 240 : i32
    %148 = tpu.dynamic_rotate %86 by %c240_i32 dim 1 : vector<4x256xf32>, i32 -> vector<4x256xf32>
    %cst_49 = arith.constant 0.000000e+00 : f32
    %149 = vector.shape_cast %5 : vector<1x256xi1> to vector<1x256xi1>
    %150 = vector.broadcast %149 : vector<1x256xi1> to vector<4x256xi1>
    %151 = vector.broadcast %cst_49 : f32 to vector<4x256xf32>
    %152 = arith.select %150, %148, %151 : vector<4x256xi1>, vector<4x256xf32>
    %153 = vector.extract_strided_slice %87 {offsets = [0, 7], sizes = [4, 1], strides = [1, 1]} : vector<4x9xf32> to vector<4x1xf32>
    %154 = vector.broadcast %153 : vector<4x1xf32> to vector<4x256xf32>
    %155 = arith.mulf %152, %154 : vector<4x256xf32>
    %156 = arith.addf %147, %155 : vector<4x256xf32>
    %c239_i32 = arith.constant 239 : i32
    %157 = tpu.dynamic_rotate %86 by %c239_i32 dim 1 : vector<4x256xf32>, i32 -> vector<4x256xf32>
    %cst_50 = arith.constant 0.000000e+00 : f32
    %158 = vector.shape_cast %13 : vector<1x256xi1> to vector<1x256xi1>
    %159 = vector.broadcast %158 : vector<1x256xi1> to vector<4x256xi1>
    %160 = vector.broadcast %cst_50 : f32 to vector<4x256xf32>
    %161 = arith.select %159, %157, %160 : vector<4x256xi1>, vector<4x256xf32>
    %162 = vector.extract_strided_slice %87 {offsets = [0, 8], sizes = [4, 1], strides = [1, 1]} : vector<4x9xf32> to vector<4x1xf32>
    %163 = vector.broadcast %162 : vector<4x1xf32> to vector<4x256xf32>
    %164 = arith.mulf %161, %163 : vector<4x256xf32>
    %165 = arith.addf %156, %164 : vector<4x256xf32>
    %c12 = arith.constant 12 : index
    %c0_51 = arith.constant 0 : index
    %166 = vector.load %arg17[%c12, %c0_51] : memref<16x256xf32, #tpu.memory_space<vmem>>, vector<4x256xf32>
    tpu.vector_store %arg17[%c12, %c0_51], %165 {strides = array<i32>} : memref<16x256xf32, #tpu.memory_space<vmem>>, vector<4x256xf32>,
    %c0_52 = arith.constant 0 : index
    %c0_53 = arith.constant 0 : index
    %167 = vector.load %arg17[%c0_52, %c0_53] : memref<16x256xf32, #tpu.memory_space<vmem>>, vector<16x256xf32>
    %c0_54 = arith.constant 0 : index
    %c0_55 = arith.constant 0 : index
    %168 = vector.load %arg10[%c0_54, %c0_55] : memref<16x1xf32, #tpu.memory_space<vmem>>, vector<16x1xf32>
    %c0_56 = arith.constant 0 : index
    %c0_57 = arith.constant 0 : index
    %169 = vector.load %arg11[%c0_56, %c0_57] : memref<16x1xf32, #tpu.memory_space<vmem>>, vector<16x1xf32>
    %cst_58 = arith.constant dense<0.000000e+00> : vector<256xf32>
    %170 = vector.multi_reduction <add>, %167, %cst_58 [0] : vector<16x256xf32> to vector<256xf32>
    %171 = vector.shape_cast %170 : vector<256xf32> to vector<1x256xf32>
    %172 = arith.mulf %167, %167 : vector<16x256xf32>
    %cst_59 = arith.constant dense<0.000000e+00> : vector<256xf32>
    %173 = vector.multi_reduction <add>, %172, %cst_59 [0] : vector<16x256xf32> to vector<256xf32>
    %174 = vector.shape_cast %173 : vector<256xf32> to vector<1x256xf32>
    %cst_60 = arith.constant 6.250000e-02 : f32
    %175 = vector.broadcast %cst_60 : f32 to vector<1x256xf32>
    %176 = arith.mulf %171, %175 : vector<1x256xf32>
    %cst_61 = arith.constant 6.250000e-02 : f32
    %177 = vector.broadcast %cst_61 : f32 to vector<1x256xf32>
    %178 = arith.mulf %174, %177 : vector<1x256xf32>
    %179 = arith.mulf %176, %176 : vector<1x256xf32>
    %180 = arith.subf %178, %179 : vector<1x256xf32>
    %cst_62 = arith.constant 9.99999997E-7 : f32
    %181 = vector.broadcast %cst_62 : f32 to vector<1x256xf32>
    %182 = arith.addf %180, %181 : vector<1x256xf32>
    %183 = math.rsqrt %182 : vector<1x256xf32>
    %184 = vector.broadcast %176 : vector<1x256xf32> to vector<16x256xf32>
    %185 = arith.subf %167, %184 : vector<16x256xf32>
    %186 = vector.broadcast %183 : vector<1x256xf32> to vector<16x256xf32>
    %187 = arith.mulf %185, %186 : vector<16x256xf32>
    %188 = vector.broadcast %168 : vector<16x1xf32> to vector<16x256xf32>
    %189 = arith.mulf %187, %188 : vector<16x256xf32>
    %190 = vector.broadcast %169 : vector<16x1xf32> to vector<16x256xf32>
    %191 = arith.addf %189, %190 : vector<16x256xf32>
    %c0_63 = arith.constant 0 : index
    %c0_64 = arith.constant 0 : index
    %192 = vector.load %arg12[%c0_63, %c0_64] : memref<16x9xf32, #tpu.memory_space<vmem>>, vector<16x9xf32>
    %c0_65 = arith.constant 0 : index
    %c0_66 = arith.constant 0 : index
    %193 = vector.load %arg13[%c0_65, %c0_66] : memref<16x1xf32, #tpu.memory_space<vmem>>, vector<16x1xf32>
    %194 = vector.extract_strided_slice %192 {offsets = [0, 4], sizes = [16, 1], strides = [1, 1]} : vector<16x9xf32> to vector<16x1xf32>
    %195 = vector.broadcast %194 : vector<16x1xf32> to vector<16x256xf32>
    %196 = arith.mulf %191, %195 : vector<16x256xf32>
    %197 = vector.broadcast %193 : vector<16x1xf32> to vector<16x256xf32>
    %198 = arith.addf %196, %197 : vector<16x256xf32>
    %c17_i32_67 = arith.constant 17 : i32
    %199 = tpu.dynamic_rotate %191 by %c17_i32_67 dim 1 : vector<16x256xf32>, i32 -> vector<16x256xf32>
    %cst_68 = arith.constant 0.000000e+00 : f32
    %200 = vector.shape_cast %10 : vector<1x256xi1> to vector<1x256xi1>
    %201 = vector.broadcast %200 : vector<1x256xi1> to vector<16x256xi1>
    %202 = vector.broadcast %cst_68 : f32 to vector<16x256xf32>
    %203 = arith.select %201, %199, %202 : vector<16x256xi1>, vector<16x256xf32>
    %204 = vector.extract_strided_slice %192 {offsets = [0, 0], sizes = [16, 1], strides = [1, 1]} : vector<16x9xf32> to vector<16x1xf32>
    %205 = vector.broadcast %204 : vector<16x1xf32> to vector<16x256xf32>
    %206 = arith.mulf %203, %205 : vector<16x256xf32>
    %207 = arith.addf %198, %206 : vector<16x256xf32>
    %c16_i32_69 = arith.constant 16 : i32
    %208 = tpu.dynamic_rotate %191 by %c16_i32_69 dim 1 : vector<16x256xf32>, i32 -> vector<16x256xf32>
    %cst_70 = arith.constant 0.000000e+00 : f32
    %209 = vector.shape_cast %3 : vector<1x256xi1> to vector<1x256xi1>
    %210 = vector.broadcast %209 : vector<1x256xi1> to vector<16x256xi1>
    %211 = vector.broadcast %cst_70 : f32 to vector<16x256xf32>
    %212 = arith.select %210, %208, %211 : vector<16x256xi1>, vector<16x256xf32>
    %213 = vector.extract_strided_slice %192 {offsets = [0, 1], sizes = [16, 1], strides = [1, 1]} : vector<16x9xf32> to vector<16x1xf32>
    %214 = vector.broadcast %213 : vector<16x1xf32> to vector<16x256xf32>
    %215 = arith.mulf %212, %214 : vector<16x256xf32>
    %216 = arith.addf %207, %215 : vector<16x256xf32>
    %c15_i32_71 = arith.constant 15 : i32
    %217 = tpu.dynamic_rotate %191 by %c15_i32_71 dim 1 : vector<16x256xf32>, i32 -> vector<16x256xf32>
    %cst_72 = arith.constant 0.000000e+00 : f32
    %218 = vector.shape_cast %11 : vector<1x256xi1> to vector<1x256xi1>
    %219 = vector.broadcast %218 : vector<1x256xi1> to vector<16x256xi1>
    %220 = vector.broadcast %cst_72 : f32 to vector<16x256xf32>
    %221 = arith.select %219, %217, %220 : vector<16x256xi1>, vector<16x256xf32>
    %222 = vector.extract_strided_slice %192 {offsets = [0, 2], sizes = [16, 1], strides = [1, 1]} : vector<16x9xf32> to vector<16x1xf32>
    %223 = vector.broadcast %222 : vector<16x1xf32> to vector<16x256xf32>
    %224 = arith.mulf %221, %223 : vector<16x256xf32>
    %225 = arith.addf %216, %224 : vector<16x256xf32>
    %c1_i32_73 = arith.constant 1 : i32
    %226 = tpu.dynamic_rotate %191 by %c1_i32_73 dim 1 : vector<16x256xf32>, i32 -> vector<16x256xf32>
    %cst_74 = arith.constant 0.000000e+00 : f32
    %227 = vector.shape_cast %7 : vector<1x256xi1> to vector<1x256xi1>
    %228 = vector.broadcast %227 : vector<1x256xi1> to vector<16x256xi1>
    %229 = vector.broadcast %cst_74 : f32 to vector<16x256xf32>
    %230 = arith.select %228, %226, %229 : vector<16x256xi1>, vector<16x256xf32>
    %231 = vector.extract_strided_slice %192 {offsets = [0, 3], sizes = [16, 1], strides = [1, 1]} : vector<16x9xf32> to vector<16x1xf32>
    %232 = vector.broadcast %231 : vector<16x1xf32> to vector<16x256xf32>
    %233 = arith.mulf %230, %232 : vector<16x256xf32>
    %234 = arith.addf %225, %233 : vector<16x256xf32>
    %c255_i32_75 = arith.constant 255 : i32
    %235 = tpu.dynamic_rotate %191 by %c255_i32_75 dim 1 : vector<16x256xf32>, i32 -> vector<16x256xf32>
    %cst_76 = arith.constant 0.000000e+00 : f32
    %236 = vector.shape_cast %9 : vector<1x256xi1> to vector<1x256xi1>
    %237 = vector.broadcast %236 : vector<1x256xi1> to vector<16x256xi1>
    %238 = vector.broadcast %cst_76 : f32 to vector<16x256xf32>
    %239 = arith.select %237, %235, %238 : vector<16x256xi1>, vector<16x256xf32>
    %240 = vector.extract_strided_slice %192 {offsets = [0, 5], sizes = [16, 1], strides = [1, 1]} : vector<16x9xf32> to vector<16x1xf32>
    %241 = vector.broadcast %240 : vector<16x1xf32> to vector<16x256xf32>
    %242 = arith.mulf %239, %241 : vector<16x256xf32>
    %243 = arith.addf %234, %242 : vector<16x256xf32>
    %c241_i32_77 = arith.constant 241 : i32
    %244 = tpu.dynamic_rotate %191 by %c241_i32_77 dim 1 : vector<16x256xf32>, i32 -> vector<16x256xf32>
    %cst_78 = arith.constant 0.000000e+00 : f32
    %245 = vector.shape_cast %12 : vector<1x256xi1> to vector<1x256xi1>
    %246 = vector.broadcast %245 : vector<1x256xi1> to vector<16x256xi1>
    %247 = vector.broadcast %cst_78 : f32 to vector<16x256xf32>
    %248 = arith.select %246, %244, %247 : vector<16x256xi1>, vector<16x256xf32>
    %249 = vector.extract_strided_slice %192 {offsets = [0, 6], sizes = [16, 1], strides = [1, 1]} : vector<16x9xf32> to vector<16x1xf32>
    %250 = vector.broadcast %249 : vector<16x1xf32> to vector<16x256xf32>
    %251 = arith.mulf %248, %250 : vector<16x256xf32>
    %252 = arith.addf %243, %251 : vector<16x256xf32>
    %c240_i32_79 = arith.constant 240 : i32
    %253 = tpu.dynamic_rotate %191 by %c240_i32_79 dim 1 : vector<16x256xf32>, i32 -> vector<16x256xf32>
    %cst_80 = arith.constant 0.000000e+00 : f32
    %254 = vector.shape_cast %5 : vector<1x256xi1> to vector<1x256xi1>
    %255 = vector.broadcast %254 : vector<1x256xi1> to vector<16x256xi1>
    %256 = vector.broadcast %cst_80 : f32 to vector<16x256xf32>
    %257 = arith.select %255, %253, %256 : vector<16x256xi1>, vector<16x256xf32>
    %258 = vector.extract_strided_slice %192 {offsets = [0, 7], sizes = [16, 1], strides = [1, 1]} : vector<16x9xf32> to vector<16x1xf32>
    %259 = vector.broadcast %258 : vector<16x1xf32> to vector<16x256xf32>
    %260 = arith.mulf %257, %259 : vector<16x256xf32>
    %261 = arith.addf %252, %260 : vector<16x256xf32>
    %c239_i32_81 = arith.constant 239 : i32
    %262 = tpu.dynamic_rotate %191 by %c239_i32_81 dim 1 : vector<16x256xf32>, i32 -> vector<16x256xf32>
    %cst_82 = arith.constant 0.000000e+00 : f32
    %263 = vector.shape_cast %13 : vector<1x256xi1> to vector<1x256xi1>
    %264 = vector.broadcast %263 : vector<1x256xi1> to vector<16x256xi1>
    %265 = vector.broadcast %cst_82 : f32 to vector<16x256xf32>
    %266 = arith.select %264, %262, %265 : vector<16x256xi1>, vector<16x256xf32>
    %267 = vector.extract_strided_slice %192 {offsets = [0, 8], sizes = [16, 1], strides = [1, 1]} : vector<16x9xf32> to vector<16x1xf32>
    %268 = vector.broadcast %267 : vector<16x1xf32> to vector<16x256xf32>
    %269 = arith.mulf %266, %268 : vector<16x256xf32>
    %270 = arith.addf %261, %269 : vector<16x256xf32>
    %cst_83 = arith.constant 0.707106769 : f32
    %271 = vector.broadcast %cst_83 : f32 to vector<16x256xf32>
    %272 = arith.mulf %270, %271 : vector<16x256xf32>
    %273 = math.absf %272 : vector<16x256xf32>
    %cst_84 = arith.constant 0.327591091 : f32
    %274 = vector.broadcast %cst_84 : f32 to vector<16x256xf32>
    %275 = arith.mulf %274, %273 : vector<16x256xf32>
    %cst_85 = arith.constant 1.000000e+00 : f32
    %276 = vector.broadcast %cst_85 : f32 to vector<16x256xf32>
    %277 = arith.addf %276, %275 : vector<16x256xf32>
    %278 = tpu.reciprocal %277 {approx = true} : vector<16x256xf32> -> vector<16x256xf32>
    %cst_86 = arith.constant 1.06140542 : f32
    %279 = vector.broadcast %cst_86 : f32 to vector<16x256xf32>
    %280 = arith.mulf %279, %278 : vector<16x256xf32>
    %cst_87 = arith.constant -1.45315206 : f32
    %281 = vector.broadcast %cst_87 : f32 to vector<16x256xf32>
    %282 = arith.addf %280, %281 : vector<16x256xf32>
    %283 = arith.mulf %282, %278 : vector<16x256xf32>
    %cst_88 = arith.constant 1.42141378 : f32
    %284 = vector.broadcast %cst_88 : f32 to vector<16x256xf32>
    %285 = arith.addf %283, %284 : vector<16x256xf32>
    %286 = arith.mulf %285, %278 : vector<16x256xf32>
    %cst_89 = arith.constant -0.284496725 : f32
    %287 = vector.broadcast %cst_89 : f32 to vector<16x256xf32>
    %288 = arith.addf %286, %287 : vector<16x256xf32>
    %289 = arith.mulf %288, %278 : vector<16x256xf32>
    %cst_90 = arith.constant 0.254829586 : f32
    %290 = vector.broadcast %cst_90 : f32 to vector<16x256xf32>
    %291 = arith.addf %289, %290 : vector<16x256xf32>
    %292 = arith.mulf %291, %278 : vector<16x256xf32>
    %cst_91 = arith.constant 0.000000e+00 : f32
    %293 = vector.broadcast %cst_91 : f32 to vector<16x256xf32>
    %294 = arith.subf %293, %273 : vector<16x256xf32>
    %295 = arith.mulf %294, %273 : vector<16x256xf32>
    %296 = math.exp %295 : vector<16x256xf32>
    %297 = arith.mulf %292, %296 : vector<16x256xf32>
    %cst_92 = arith.constant 1.000000e+00 : f32
    %298 = vector.broadcast %cst_92 : f32 to vector<16x256xf32>
    %299 = arith.subf %298, %297 : vector<16x256xf32>
    %cst_93 = arith.constant 0.000000e+00 : f32
    %300 = vector.broadcast %cst_93 : f32 to vector<16x256xf32>
    %301 = arith.cmpf oge, %272, %300 : vector<16x256xf32>
    %cst_94 = arith.constant 0.000000e+00 : f32
    %302 = vector.broadcast %cst_94 : f32 to vector<16x256xf32>
    %303 = arith.subf %302, %299 : vector<16x256xf32>
    %304 = arith.select %301, %299, %303 : vector<16x256xi1>, vector<16x256xf32>
    %cst_95 = arith.constant 5.000000e-01 : f32
    %305 = vector.broadcast %cst_95 : f32 to vector<16x256xf32>
    %306 = arith.mulf %305, %270 : vector<16x256xf32>
    %cst_96 = arith.constant 1.000000e+00 : f32
    %307 = vector.broadcast %cst_96 : f32 to vector<16x256xf32>
    %308 = arith.addf %307, %304 : vector<16x256xf32>
    %309 = arith.mulf %306, %308 : vector<16x256xf32>
    %c0_97 = arith.constant 0 : index
    %c0_98 = arith.constant 0 : index
    %310 = vector.load %arg14[%c0_97, %c0_98] : memref<8x16xf32, #tpu.memory_space<vmem>>, vector<8x16xf32>
    %cst_99 = arith.constant dense<0.000000e+00> : vector<8x256xf32>
    %311 = tpu.matmul %310, %309, %cst_99 {dimension_numbers = #tpu.dot_dimension_numbers<[1], [0], [0], [1], [0, 0, 1, 1], [], []>} : vector<8x16xf32>, vector<16x256xf32>, vector<8x256xf32> -> vector<8x256xf32>
    %c0_100 = arith.constant 0 : index
    %c0_101 = arith.constant 0 : index
    %312 = vector.load %arg15[%c0_100, %c0_101] : memref<8x1xf32, #tpu.memory_space<vmem>>, vector<8x1xf32>
    %313 = vector.broadcast %312 : vector<8x1xf32> to vector<8x256xf32>
    %314 = arith.addf %311, %313 : vector<8x256xf32>
    %c0_102 = arith.constant 0 : index
    %c0_103 = arith.constant 0 : index
    %c0_104 = arith.constant 0 : index
    %315 = vector.load %arg16[%c0_102, %c0_103, %c0_104] : memref<1x8x256xf32, #tpu.memory_space<vmem>>, vector<1x8x256xf32>
    %316 = vector.shape_cast %315 : vector<1x8x256xf32> to vector<8x256xf32>
    %317 = vector.shape_cast %314 : vector<8x256xf32> to vector<1x8x256xf32>
    tpu.vector_store %arg16[%c0_102, %c0_103, %c0_104], %317 {strides = array<i32>} : memref<1x8x256xf32, #tpu.memory_space<vmem>>, vector<1x8x256xf32>,
    return
  }
  func.func @transform_0(%arg0: i32) -> (i32, i32, i32) {
    %c0_i32 = arith.constant 0 : i32
    %c0_i32_0 = arith.constant 0 : i32
    %c0_i32_1 = arith.constant 0 : i32
    return %arg0, %c0_i32, %c0_i32_0 : i32, i32, i32
  }
  func.func @transform_1(%arg0: i32) -> (i32, i32) {
    %c0_i32 = arith.constant 0 : i32
    %c0_i32_0 = arith.constant 0 : i32
    %c0_i32_1 = arith.constant 0 : i32
    return %c0_i32, %c0_i32_0 : i32, i32
  }
  func.func @transform_2(%arg0: i32) -> (i32, i32) {
    %c0_i32 = arith.constant 0 : i32
    %c0_i32_0 = arith.constant 0 : i32
    %c0_i32_1 = arith.constant 0 : i32
    return %c0_i32, %c0_i32_0 : i32, i32
  }
  func.func @transform_3(%arg0: i32) -> (i32, i32) {
    %c0_i32 = arith.constant 0 : i32
    %c0_i32_0 = arith.constant 0 : i32
    %c0_i32_1 = arith.constant 0 : i32
    return %c0_i32, %c0_i32_0 : i32, i32
  }
  func.func @transform_4(%arg0: i32) -> (i32, i32) {
    %c0_i32 = arith.constant 0 : i32
    %c0_i32_0 = arith.constant 0 : i32
    %c0_i32_1 = arith.constant 0 : i32
    return %c0_i32, %c0_i32_0 : i32, i32
  }
  func.func @transform_5(%arg0: i32) -> (i32, i32) {
    %c0_i32 = arith.constant 0 : i32
    %c0_i32_0 = arith.constant 0 : i32
    %c0_i32_1 = arith.constant 0 : i32
    return %c0_i32, %c0_i32_0 : i32, i32
  }
  func.func @transform_6(%arg0: i32) -> (i32, i32) {
    %c0_i32 = arith.constant 0 : i32
    %c0_i32_0 = arith.constant 0 : i32
    %c0_i32_1 = arith.constant 0 : i32
    return %c0_i32, %c0_i32_0 : i32, i32
  }
  func.func @transform_7(%arg0: i32) -> (i32, i32) {
    %c0_i32 = arith.constant 0 : i32
    %c0_i32_0 = arith.constant 0 : i32
    %c0_i32_1 = arith.constant 0 : i32
    return %c0_i32, %c0_i32_0 : i32, i32
  }
  func.func @transform_8(%arg0: i32) -> (i32, i32) {
    %c0_i32 = arith.constant 0 : i32
    %c0_i32_0 = arith.constant 0 : i32
    %c0_i32_1 = arith.constant 0 : i32
    return %c0_i32, %c0_i32_0 : i32, i32
  }
  func.func @transform_9(%arg0: i32) -> (i32, i32) {
    %c0_i32 = arith.constant 0 : i32
    %c0_i32_0 = arith.constant 0 : i32
    %c0_i32_1 = arith.constant 0 : i32
    return %c0_i32, %c0_i32_0 : i32, i32
  }
  func.func @transform_10(%arg0: i32) -> (i32, i32) {
    %c0_i32 = arith.constant 0 : i32
    %c0_i32_0 = arith.constant 0 : i32
    %c0_i32_1 = arith.constant 0 : i32
    return %c0_i32, %c0_i32_0 : i32, i32
  }
  func.func @transform_11(%arg0: i32) -> (i32, i32) {
    %c0_i32 = arith.constant 0 : i32
    %c0_i32_0 = arith.constant 0 : i32
    %c0_i32_1 = arith.constant 0 : i32
    return %c0_i32, %c0_i32_0 : i32, i32
  }
  func.func @transform_12(%arg0: i32) -> (i32, i32) {
    %c0_i32 = arith.constant 0 : i32
    %c0_i32_0 = arith.constant 0 : i32
    %c0_i32_1 = arith.constant 0 : i32
    return %c0_i32, %c0_i32_0 : i32, i32
  }
  func.func @transform_13(%arg0: i32) -> (i32, i32) {
    %c0_i32 = arith.constant 0 : i32
    %c0_i32_0 = arith.constant 0 : i32
    %c0_i32_1 = arith.constant 0 : i32
    return %c0_i32, %c0_i32_0 : i32, i32
  }
  func.func @transform_14(%arg0: i32) -> (i32, i32) {
    %c0_i32 = arith.constant 0 : i32
    %c0_i32_0 = arith.constant 0 : i32
    %c0_i32_1 = arith.constant 0 : i32
    return %c0_i32, %c0_i32_0 : i32, i32
  }
  func.func @transform_15(%arg0: i32) -> (i32, i32, i32) {
    %c0_i32 = arith.constant 0 : i32
    %c0_i32_0 = arith.constant 0 : i32
    %c0_i32_1 = arith.constant 0 : i32
    return %arg0, %c0_i32, %c0_i32_0 : i32, i32, i32
  }
}

</mosaic_0001>

<bundles_post_ra>
// kernel: squeeze.20
= control target key start
LH: loop header
LB: loop body
LE: loop exit
PB: predicated region body
PF: predicated region fallthrough
CT: control target
= control target key end

     0   :  { %vm15_vm0 = vcmask 130048   ;;  %s59_s0 = inlined_call_operand.vmem [shape: f32[16,3,3], index: 0, kind: input, shape index: {}]   ;;  %s60_s1 = inlined_call_operand.vmem [shape: f32[16,9], index: 1, kind: output, shape index: {}]  }
   0x1   :  { %v27_v0 = vld [vmem:[%s59_s0 + $0x8] sm:$0xf]  ;;  %v28_v1 = vld [vmem:[%s59_s0 + $0x4] sm:$0xf]  ;;  %v12_v2 = vld [vmem:[%s59_s0] sm:$0xf] }
   0x2   :  { %7 = vst [vmem:[#allocation0] sm:$0xf] %v27_v0 }
   0x3   :  { %11 = vst [vmem:[#allocation0 + $0x10] sm:$0xf] %v28_v1 }
   0x4   :  { %13 = vst [vmem:[#allocation0 + $0x8] sm:$0xf] %v12_v2 }
   0x9   :  { %v23_v3 = vld [vmem:[#allocation0] sm:$0x7]  }
   0xa   :  { %v18_v4 = vld [vmem:[#allocation0 + $0x10] sm:$0x7]   ;;  %30 = vst.msk [vmem:[%s60_s1 + $0x6] sm:$0x7] %vm15_vm0, %v23_v3  }
   0xb   :  { %v14_v5 = vld [vmem:[#allocation0 + $0x8] sm:$0x7]   ;;  %29 = vst.msk [vmem:[%s60_s1 + $0x3] sm:$0x7] %vm15_vm0, %v18_v4  }
   0xc   :  { %16 = vst.msk [vmem:[%s60_s1] sm:$0x7] %vm15_vm0, %v14_v5  }

// kernel: ghpa_forward_pallas.1
= control target key start
LH: loop header
LB: loop body
LE: loop exit
PB: predicated region body
PF: predicated region fallthrough
CT: control target
= control target key end

     0   :  { %s1737_s18 = smov 0   ;;  %s2493_s0 = inlined_call_operand.vmem [shape: f32[2,16,256], index: 0, kind: input, shape index: {}]   ;;  %s2494_s1 = inlined_call_operand.vmem [shape: f32[16,256], index: 1, kind: input, shape index: {}]   ;;  %s2495_s2 = inlined_call_operand.vmem [shape: s32[2,256], index: 2, kind: input, shape index: {}]   ;;  %s2496_s3 = inlined_call_operand.vmem [shape: f32[16,1], index: 3, kind: input, shape index: {}]   ;;  %s2497_s4 = inlined_call_operand.vmem [shape: f32[16,1], index: 4, kind: input, shape index: {}]   ;;  %s2498_s5 = inlined_call_operand.vmem [shape: f32[4,16], index: 5, kind: input, shape index: {}]   ;;  %s2499_s6 = inlined_call_operand.vmem [shape: f32[4,1], index: 6, kind: input, shape index: {}]   ;;  %s2500_s7 = inlined_call_operand.vmem [shape: f32[4,9], index: 7, kind: input, shape index: {}]   ;;  %s2501_s8 = inlined_call_operand.vmem [shape: f32[4,1], index: 8, kind: input, shape index: {}]   ;;  %s2502_s9 = inlined_call_operand.vmem [shape: f32[16,1], index: 9, kind: input, shape index: {}]   ;;  %s2503_s10 = inlined_call_operand.vmem [shape: f32[16,1], index: 10, kind: input, shape index: {}]   ;;  %s2504_s11 = inlined_call_operand.vmem [shape: f32[16,9], index: 11, kind: input, shape index: {}]   ;;  %s2505_s12 = inlined_call_operand.vmem [shape: f32[16,1], index: 12, kind: input, shape index: {}]   ;;  %s2506_s13 = inlined_call_operand.vmem [shape: f32[8,16], index: 13, kind: input, shape index: {}]   ;;  %s2507_s14 = inlined_call_operand.vmem [shape: f32[8,1], index: 14, kind: input, shape index: {}]   ;;  %s2508_s15 = inlined_call_operand.vmem [shape: f32[2,8,256], index: 15, kind: output, shape index: {}]  }
   0x1 LB: > { %s1534_s19 = sadd.s32 4294967295, %s1638_s18   ;;  %p1538_p0 = scmp.ge.s32.totalorder %s1638_s18, 1  ;;  %s1638_s18 = sphi %s1737_s18, %s25_s18  }
   0x2   : > { %p437_p1 = scmp.lt.s32.totalorder %s1638_s18, 3 }
   0x4   : > { %p438_p2 = pnand %p1538_p0, %p437_p1 }
   0x5   : > { %p485_p3 = scmp.lt.s32.totalorder (!%p438_p2), %s1534_s19, 1  ;;  %s1649_s25 = smov (!%p438_p2), 17  }
   0x6   : > { %441 = sbr.rel (%p438_p2) target bundleno = 937 (0x3a9), region = 80  ;;  %s1650_s26 = smov (!%p438_p2), 16  }
   0x7   : > { %s1651_s27 = smov (!%p438_p2), 1   ;;  %s1653_s29 = smov (!%p438_p2), 127  }
   0x8   : > { %s1654_s30 = smov (!%p438_p2), 113   ;;  %s1656_s17 = smov (!%p438_p2), 111  }
   0xb   : > { %v513_v0 = vld [vmem:[%s2497_s4 + $0x8] sm:$0xff]  ;;  %v1640_v2 = vmov 0   ;;  %v512_v3 = vld [vmem:[%s2497_s4] sm:$0xff]  ;;  %s2602_s19 = smov (!%p485_p3, %s1534_s19), 1  ;;  %v1641_v61 = vmov 2   ;;  %vm2509_vm6 = vcmask 130048  }
   0xc   : > { %v511_v1 = vld [vmem:[%s2496_s3 + $0x8] sm:$0xff]  ;;  %1578 = vset.pattern.permute.xlu1 %v1640_v2  ;;  %1577 = vset.pattern.permute.xlu0 %v1640_v2  ;;  %v510_v4 = vld [vmem:[%s2496_s3] sm:$0xff]  ;;  %s1550_s28 = sshll.u32 %s2602_s19, 5 }
   0xd   : > { %605 = vperm.xlu1 %1578, %v513_v0   ;;  %591 = vperm.xlu0 %1577, %v511_v1   ;;  %s489_s16 = scalar_lea.vmem %s2493_s0, %s1550_s28  ;;  %v625_v59 = vld [vmem:[%s2499_s6] sm:$0xf]  ;;  %s1652_s28 = smov 15  }
   0xe   : > { %1579 = vset.pattern.permute.xlu2 %v1640_v2  ;;  %v1766_v5 = vld [vmem:[%s489_s16] sm:$0xff]  ;;  %v1768_v6 = vld [vmem:[%s489_s16 + $0x8] sm:$0xff]  ;;  %v1770_v7 = vld [vmem:[%s489_s16 + $0x10] sm:$0xff] }
   0xf   : > { %v1772_v8 = vld [vmem:[%s489_s16 + $0x18] sm:$0xff]  ;;  %v514_v9 = vadd.f32 %v1770_v7, %v1766_v5  ;;  %v528_v10 = vmul.f32 %v1766_v5, %v1766_v5  ;;  %v529_v11 = vmul.f32 %v1768_v6, %v1768_v6  ;;  %v530_v12 = vmul.f32 %v1770_v7, %v1770_v7  ;;  %628 = vperm.xlu2 %1579, %v625_v59   ;;  %v1800_v60 = vld [vmem:[%s2500_s7] sm:$0xf]  ;;  %s1655_s16 = smov 112  }
  0x10   : > { %v521_v13 = vadd.f32 %v1772_v8, %v1768_v6  ;;  %v531_v14 = vmul.f32 %v1772_v8, %v1772_v8 }
  0x11   : > { %v515_v15 = vrot.slane %v514_v9, 4  ;;  %v532_v16 = vadd.f32 %v530_v12, %v528_v10  ;;  %v1643_v12 = vmov 3  }
  0x12   : > { %v522_v17 = vrot.slane %v521_v13, 4  ;;  %v539_v18 = vadd.f32 %v531_v14, %v529_v11 }
  0x13   : > { %v516_v19 = vadd.f32 %v515_v15, %v514_v9  ;;  %v533_v20 = vrot.slane %v532_v16, 4  ;;  %v1642_v9 = vmov 4  }
  0x14   : > { %v523_v21 = vadd.f32 %v522_v17, %v521_v13  ;;  %v540_v22 = vrot.slane %v539_v18, 4 }
  0x15   : > { %600 = vperm.xlu1 %1578, %v512_v3   ;;  %586 = vperm.xlu0 %1577, %v510_v4   ;;  %v517_v23 = vrot.slane %v516_v19, 2  ;;  %v534_v24 = vadd.f32 %v533_v20, %v532_v16  ;;  %v614_v20 = vld [vmem:[%s2494_s1 + $0x10] sm:$0xff] }
  0x16   : > { %v524_v25 = vrot.slane %v523_v21, 2  ;;  %v541_v26 = vadd.f32 %v540_v22, %v539_v18 }
  0x17   : > { %v518_v27 = vadd.f32 %v517_v23, %v516_v19  ;;  %v535_v28 = vrot.slane %v534_v24, 2  ;;  %1580 = vset.pattern.permute.xlu2 %v1642_v9  ;;  %v1644_v23 = vmov 5  }
  0x18   : > { %v525_v29 = vadd.f32 %v524_v25, %v523_v21  ;;  %v542_v30 = vrot.slane %v541_v26, 2  ;;  %731 = vperm.xlu2 %1580, %v1800_v60   ;;  %v615_v21 = vld [vmem:[%s2494_s1 + $0x18] sm:$0xff] }
  0x19   : > { %v519_v31 = vrot.slane %v518_v27, 1  ;;  %v536_v32 = vadd.f32 %v535_v28, %v534_v24  ;;  %v934_v28 = vld [vmem:[%s2502_s9 + $0x8] sm:$0xff] }
  0x1a   : > { %v526_v33 = vrot.slane %v525_v29, 1  ;;  %v543_v34 = vadd.f32 %v542_v30, %v541_v26 }
  0x1b   : > { %v520_v35 = vadd.f32 %v519_v31, %v518_v27  ;;  %v537_v36 = vrot.slane %v536_v32, 1 }
  0x1c   : > { %v527_v37 = vadd.f32 %v526_v33, %v525_v29  ;;  %v544_v38 = vrot.slane %v543_v34, 1  ;;  %v613_v33 = vld [vmem:[%s2494_s1 + $0x8] sm:$0xff] }
  0x1d   : > { %v538_v39 = vadd.f32 %v537_v36, %v536_v32  ;;  %v1786_v40 = vmul.f32 0.0625, %v520_v35  ;;  %1583 = vset.pattern.permute.xlu1 %v1641_v61  ;;  %v612_v32 = vld [vmem:[%s2494_s1] sm:$0xff] }
  0x1e   : > { %v545_v41 = vadd.f32 %v544_v38, %v543_v34  ;;  %v1788_v42 = vmul.f32 0.0625, %v527_v37  ;;  %804 = vperm.xlu1 %1583, %v1800_v60   ;;  %v624_v36 = vld [vmem:[%s2498_s5] sm:$0xf]  ;;  %v1645_v37 = vmov 6  }
  0x1f   : > { %v548_v43 = vmul.f32 0.0625, %v538_v39  ;;  %v550_v44 = vmul.f32 %v1786_v40, %v1786_v40  ;;  %v578_v3 = vsub.f32 %v1770_v7, %v1786_v40  ;;  %v576_v7 = vsub.f32 %v1766_v5, %v1786_v40  ;;  %v935_v40 = vld [vmem:[%s2503_s10] sm:$0xff] }
  0x20   : > { %v549_v45 = vmul.f32 0.0625, %v545_v41  ;;  %v551_v46 = vmul.f32 %v1788_v42, %v1788_v42  ;;  %v579_v4 = vsub.f32 %v1772_v8, %v1788_v42  ;;  %v728_v8 = vld [vmem:[%s2501_s8] sm:$0xf]  ;;  %v577_v19 = vsub.f32 %v1768_v6, %v1788_v42  ;;  %1581 = vset.pattern.permute.xlu2 %v1640_v2  ;;  %v1038_v41 = vld [vmem:[%s2505_s12 + $0x8] sm:$0xff] }
  0x21   : > { %v552_v47 = vsub.f32 %v548_v43, %v550_v44  ;;  %738 = vperm.xlu2 %1581, %v728_v8   ;;  %v1646_v42 = vmov 7   ;;  %v1647_v43 = vmov 1   ;;  %v1860_v44 = vld [vmem:[%s2504_s11 + $0x8] sm:$0xff] }
  0x22   : > { %v553_v48 = vsub.f32 %v549_v45, %v551_v46  ;;  %1582 = vset.pattern.permute.xlu0 %v1647_v43  ;;  %v1648_v45 = vmov 8   ;;  %v1037_v46 = vld [vmem:[%s2505_s12] sm:$0xff] }
  0x23   : > { %v554_v49 = vadd.f32 1e-06, %v552_v47  ;;  %782 = vperm.xlu0 %1582, %v1800_v60   ;;  %v936_v47 = vld [vmem:[%s2503_s10 + $0x8] sm:$0xff] }
  0x24   : > { %v555_v50 = vadd.f32 1e-06, %v553_v48 }
  0x25   : > { %1600 = vrsqrt.f32 %v554_v49  ;;  %vm562_vm0 = vweird.f32 %v554_v49 }
  0x26   : > { %1602 = vrsqrt.f32 %v555_v50  ;;  %vm572_vm2 = vweird.f32 %v555_v50  ;;  %1584 = vset.pattern.permute.xlu1 %v1643_v12 }
  0x27   : > { %826 = vperm.xlu1 %1584, %v1800_v60  }
  0x29   : > { %1014 = vperm.xlu2 %1581, %v934_v28  }
  0x2b   : > { %v1601_v51 = vpop.eup %1600  ;;  %1120 = vperm.xlu0 %1582, %v1860_v44  }
  0x2c   : > { %v1603_v52 = vpop.eup %1602  ;;  %v557_v53 = vmul.f32 %v1601_v51, %v554_v49  ;;  %vm563_vm1 = vweird.f32 %v1601_v51  ;;  %v933_v49 = vld [vmem:[%s2502_s9] sm:$0xff] }
  0x2d   : > { %v567_v54 = vmul.f32 %v1603_v52, %v555_v50  ;;  %vm573_vm3 = vweird.f32 %v1603_v52  ;;  %vm564_vm4 = vmor %vm562_vm0, %vm563_vm1 }
  0x2e   : > { %v558_v55 = vmul.f32 %v1601_v51, %v557_v53  ;;  %vm574_vm5 = vmor %vm572_vm2, %vm573_vm3 }
  0x2f   : > { %v568_v56 = vmul.f32 %v1603_v52, %v567_v54  ;;  %1585 = vset.pattern.permute.xlu1 %v1644_v23 }
  0x30   : > { %v559_v57 = vmul.f32 0.5, %v558_v55  ;;  %848 = vperm.xlu1 %1585, %v1800_v60  }
  0x31   : > { %v569_v58 = vmul.f32 0.5, %v568_v56  ;;  %1023 = vperm.xlu2 %1581, %v935_v40  }
  0x32   : > { %v560_v62 = vsub.f32 1.5, %v559_v57 }
  0x33   : > { %v570_v63 = vsub.f32 1.5, %v569_v58  ;;  %1591 = vset.pattern.permute.xlu0 %v1640_v2 }
  0x34   : > { %v561_v0 = vmul.f32 %v1601_v51, %v560_v62  ;;  %760 = vperm.xlu0 %1591, %v1800_v60  }
  0x35   : > { %v571_v1 = vmul.f32 %v1603_v52, %v570_v63 }
  0x36   : > { %v565_v10 = vsel %vm564_vm4, %v1601_v51, %v561_v0 }
  0x37   : > { %v575_v11 = vsel %vm574_vm5, %v1603_v52, %v571_v1  ;;  %v582_v13 = vmul.f32 %v578_v3, %v565_v10  ;;  %v580_v24 = vmul.f32 %v576_v7, %v565_v10 }
  0x38   : > { %v583_v14 = vmul.f32 %v579_v4, %v575_v11  ;;  %v581_v26 = vmul.f32 %v577_v19, %v575_v11  ;;  %1586 = vset.pattern.permute.xlu1 %v1645_v37 }
  0x39   : > { %870 = vperm.xlu1 %1586, %v1800_v60   ;;  %1060 = vperm.xlu2 %1581, %v1038_v41  }
  0x3c   : > { %1009 = vperm.xlu0 %1591, %v933_v49  }
  0x41   : > { %1587 = vset.pattern.permute.xlu1 %v1646_v42  ;;  %1088 = vperm.xlu2 %1581, %v1860_v44  }
  0x42   : > { %892 = vperm.xlu1 %1587, %v1800_v60  }
  0x49   : > { %1055 = vperm.xlu2 %1581, %v1037_v46  }
  0x4a   : > { %1588 = vset.pattern.permute.xlu1 %v1648_v45 }
  0x4b   : > { %914 = vperm.xlu1 %1588, %v1800_v60   ;;  %v1884_v60 = vld [vmem:[%s2504_s11] sm:$0xff] }
  0x51   : > { %1599 = vset.pattern.permute.xlu2 %v1648_v45 }
  0x53   : > { %1589 = vset.pattern.permute.xlu1 %v1640_v2 }
  0x54   : > { %1028 = vperm.xlu1 %1589, %v936_v47  }
  0x5c   : > { %1590 = vset.pattern.permute.xlu1 %v1642_v9 }
  0x5d   : > { %1046 = vperm.xlu1 %1590, %v1860_v44  }
  0x65   : > { %1041 = vperm.xlu1 %1590, %v1884_v60  }
  0x69   : > { %v629_v48 = vpop.permute.xlu2 %628 }
  0x6d   : > { %1592 = vset.pattern.permute.xlu1 %v1647_v43 }
  0x7f   : > { %v606_v15 = vpop.permute.xlu1 %605  ;;  %v592_v16 = vpop.permute.xlu0 %591 }
  0x80   : > { %v596_v17 = vmul.f32 %v592_v16, %v582_v13  ;;  %v597_v18 = vmul.f32 %v592_v16, %v583_v14 }
  0x82   : > { %v610_v5 = vadd.f32 %v606_v15, %v596_v17  ;;  %v611_v22 = vadd.f32 %v606_v15, %v597_v18 }
  0x84   : > { %v618_v6 = vmul.f32 %v614_v20, %v610_v5  ;;  %649 = vmatpush.msra.mxu0 %v610_v5  ;;  %v619_v25 = vmul.f32 %v615_v21, %v611_v22  ;;  %669 = vmatpush.msra.mxu1 %v611_v22 }
  0x86   : > { %622 = vst [vmem:[#allocation2 + $0x18] sm:$0xff] %v618_v6 }
  0x87   : > { %623 = vst [vmem:[#allocation2 + $0x8] sm:$0xff] %v619_v25  ;;  %v587_v27 = vpop.permute.xlu0 %586  ;;  %v601_v31 = vpop.permute.xlu1 %600 }
  0x88   : > { %v594_v29 = vmul.f32 %v587_v27, %v580_v24  ;;  %v595_v30 = vmul.f32 %v587_v27, %v581_v26 }
  0x8a   : > { %v608_v34 = vadd.f32 %v601_v31, %v594_v29  ;;  %v609_v35 = vadd.f32 %v601_v31, %v595_v30 }
  0x8c   : > { %v1841_v38 = vmul.f32 %v612_v32, %v608_v34  ;;  %650 = vmatpush.msra.mxu0 %v608_v34  ;;  %v1843_v39 = vmul.f32 %v613_v33, %v609_v35  ;;  %670 = vmatpush.msra.mxu1 %v609_v35  ;;  %v732_v32 = vpop.permute.xlu2 %731 }
  0x8d   : > { %1544 = vmatmul.msk.f32.vlgmr.msra.gmra.mxu0 %vm2509_vm6, %v624_v36  ;;  %1545 = vmatmul.msk.f32.vlgmr.msra.gmra.mxu1 %vm2509_vm6, %v624_v36 }
 0x10a   : > { %v652_v50 = vpop.f32.mrf.mxu0  ;;  %v672_v51 = vpop.f32.mrf.mxu1 }
 0x10b   : > { %v653_v52 = vadd.f32 %v652_v50, %v629_v48  ;;  %v673_v53 = vadd.f32 %v672_v51, %v629_v48 }
 0x10d   : > { %v675_v54 = vmul.f32 0.70710677, %v653_v52  ;;  %v676_v55 = vmul.f32 0.70710677, %v673_v53  ;;  %v721_v43 = vmul.f32 0.5, %v653_v52  ;;  %v722_v48 = vmul.f32 0.5, %v673_v53  ;;  %v1902_v53 = vpop.permute.xlu1 %804 }
 0x10f   : > { %v677_v56 = vand.u32 2147483647, %v675_v54  ;;  %v678_v57 = vand.u32 2147483647, %v676_v55  ;;  %vm715_vm7 = vcmp.ge.f32.partialorder %v675_v54, 0.0  ;;  %vm716_vm8 = vcmp.ge.f32.partialorder %v676_v55, 0.0 }
 0x111   : > { %v679_v58 = vmul.f32 0.3275911, %v677_v56  ;;  %v680_v59 = vmul.f32 0.3275911, %v678_v57  ;;  %v703_v1 = vsub.f32 0.0, %v677_v56  ;;  %v704_v9 = vsub.f32 0.0, %v678_v57 }
 0x113   : > { %v681_v62 = vadd.f32 1.0, %v679_v58  ;;  %v682_v63 = vadd.f32 1.0, %v680_v59  ;;  %v705_v13 = vmul.f32 %v703_v1, %v677_v56  ;;  %v706_v16 = vmul.f32 %v704_v9, %v678_v57  ;;  %v739_v56 = vpop.permute.xlu2 %738 }
 0x115   : > { %1604 = vrcp.f32 %v681_v62  ;;  %v707_v17 = vmul.f32 1.442695, %v705_v13  ;;  %v709_v20 = vmul.f32 1.442695, %v706_v16  ;;  %v1909_v55 = vpop.permute.xlu1 %826 }
 0x116   : > { %1606 = vrcp.f32 %v682_v63 }
 0x117   : > { %1608 = vpow2.f32 %v707_v17 }
 0x118   : > { %1610 = vpow2.f32 %v709_v20 }
 0x11b   : > { %v1605_v0 = vpop.eup %1604  ;;  %v1916_v62 = vpop.permute.xlu2 %1014 }
 0x11c   : > { %v1607_v3 = vpop.eup %1606  ;;  %v685_v4 = vmul.f32 1.0614054, %v1605_v0 }
 0x11d   : > { %v686_v10 = vmul.f32 1.0614054, %v1607_v3  ;;  %v1609_v28 = vpop.eup %1608  ;;  %v1914_v59 = vpop.permute.xlu1 %848 }
 0x11e   : > { %v687_v11 = vadd.f32 -1.4531521, %v685_v4  ;;  %v1611_v30 = vpop.eup %1610 }
 0x11f   : > { %v688_v14 = vadd.f32 -1.4531521, %v686_v10 }
 0x120   : > { %v689_v15 = vmul.f32 %v1605_v0, %v687_v11 }
 0x121   : > { %v690_v7 = vmul.f32 %v1607_v3, %v688_v14 }
 0x122   : > { %v691_v8 = vadd.f32 1.4214138, %v689_v15 }
 0x123   : > { %v692_v18 = vadd.f32 1.4214138, %v690_v7  ;;  %v1924_v63 = vpop.permute.xlu2 %1023  ;;  %v1960_v7 = vld [vmem:[%s2495_s2] ss:$2 sm:$0x3] }
 0x124   : > { %v693_v19 = vmul.f32 %v1605_v0, %v691_v8  ;;  %v1965_v8 = vld [vmem:[%s2495_s2 + $0x1] ss:$2 sm:$0x3]  ;;  %vm498_vm9 = vcmp.ge.s32.totalorder %v1960_v7, 1  ;;  %vm499_vm0 = vcmp.le.s32.totalorder %v1960_v7, 14  ;;  %v2554_v7 = vmov 0 }
 0x125   : > { %v694_v21 = vmul.f32 %v1607_v3, %v692_v18  ;;  %vm500_vm10 = vcmp.ge.s32.totalorder %v1965_v8, 1  ;;  %vm501_vm12 = vcmp.le.s32.totalorder %v1965_v8, 14  ;;  %v2556_v8 = vmov 0 }
 0x126   : > { %v695_v5 = vadd.f32 -0.28449672, %v693_v19  ;;  %vm502_vm11 = vmand %vm498_vm9, %vm500_vm10 }
 0x127   : > { %v696_v22 = vadd.f32 -0.28449672, %v694_v21  ;;  %v752_v20 = vsel %vm502_vm11, 1, %v1640_v2  ;;  %vm503_vm13 = vmand %vm498_vm9, %vm501_vm12 }
 0x128   : > { %v697_v24 = vmul.f32 %v1605_v0, %v695_v5  ;;  %v753_v5 = vperm.slane %v752_v20, 0  ;;  %vm504_vm5 = vmand %vm499_vm0, %vm500_vm10 }
 0x129   : > { %v698_v6 = vmul.f32 %v1607_v3, %v696_v22  ;;  %v774_v22 = vsel %vm498_vm9, 1, %v1640_v2 }
 0x12a   : > { %v699_v25 = vadd.f32 0.2548296, %v697_v24  ;;  %v754_v24 = vperm.slane %v752_v20, 1  ;;  %vm1982_vm15 = vcmp.eq.s32.totalorder %v753_v5, 1 }
 0x12b   : > { %v700_v26 = vadd.f32 0.2548296, %v698_v6  ;;  %v1929_v1 = vpop.permute.xlu2 %1060  ;;  %v775_v6 = vperm.slane %v774_v22, 0 }
 0x12c   : > { %v701_v27 = vmul.f32 %v1605_v0, %v699_v25  ;;  %v776_v25 = vperm.slane %v774_v22, 1  ;;  %vm1990_vm1 = vcmp.eq.s32.totalorder %v754_v24, 1 }
 0x12d   : > { %v702_v29 = vmul.f32 %v1607_v3, %v700_v26  ;;  %vm1999_vm3 = vcmp.eq.s32.totalorder %v775_v6, 1 }
 0x12e   : > { %v711_v31 = vmul.f32 %v1609_v28, %v701_v27  ;;  %v796_v27 = vsel %vm503_vm13, 1, %v1640_v2  ;;  %vm2003_vm4 = vcmp.eq.s32.totalorder %v776_v25, 1 }
 0x12f   : > { %v712_v33 = vmul.f32 %v1611_v30, %v702_v29  ;;  %v818_v30 = vsel %vm500_vm10, 1, %v1640_v2 }
 0x130   : > { %v713_v34 = vsub.f32 1.0, %v711_v31 }
 0x131   : > { %v714_v35 = vsub.f32 1.0, %v712_v33 }
 0x132   : > { %v717_v36 = vsub.f32 0.0, %v713_v34 }
 0x133   : > { %v718_v40 = vsub.f32 0.0, %v714_v35  ;;  %v1935_v4 = vpop.permute.xlu2 %1088 }
 0x134   : > { %v719_v41 = vsel %vm715_vm7, %v713_v34, %v717_v36  ;;  %v798_v36 = vperm.slane %v796_v27, 1 }
 0x135   : > { %v723_v46 = vadd.f32 1.0, %v719_v41  ;;  %v720_v47 = vsel %vm716_vm8, %v714_v35, %v718_v40  ;;  %v797_v35 = vperm.slane %v796_v27, 0 }
 0x136   : > { %v724_v49 = vadd.f32 1.0, %v720_v47  ;;  %vm2027_vm9 = vcmp.eq.s32.totalorder %v798_v36, 1 }
 0x137   : > { %v725_v50 = vmul.f32 %v723_v46, %v721_v43  ;;  %v819_v43 = vperm.slane %v818_v30, 0  ;;  %vm2023_vm8 = vcmp.eq.s32.totalorder %v797_v35, 1 }
 0x138   : > { %v726_v51 = vmul.f32 %v724_v49, %v722_v48 }
 0x139   : > { %v734_v57 = vmul.f32 %v732_v32, %v725_v50  ;;  %743 = vrot.lane.b32.xlu0 %v725_v50, %s1649_s25  ;;  %vm2037_vm11 = vcmp.eq.s32.totalorder %v819_v43, 1 }
 0x13a   : > { %v735_v58 = vmul.f32 %v732_v32, %v726_v51  ;;  %769 = vrot.lane.b32.xlu2 %v726_v51, %s1650_s26  ;;  %745 = vrot.lane.b32.xlu1 %v726_v51, %s1649_s25 }
 0x13b   : > { %v1890_v54 = vadd.f32 %v739_v56, %v734_v57  ;;  %v1944_v10 = vpop.permute.xlu2 %1055 }
 0x13c   : > { %v1892_v52 = vadd.f32 %v739_v56, %v735_v58  ;;  %v862_v58 = vsel %vm504_vm5, 1, %v1640_v2 }
 0x13d   : > { %v863_v27 = vperm.slane %v862_v58, 0 }
 0x141   : > { %813 = vrot.lane.b32.xlu0 %v726_v51, %s1651_s27 }
 0x142   : > { %791 = vrot.lane.b32.xlu2 %v726_v51, %s1652_s28  ;;  %767 = vrot.lane.b32.xlu1 %v725_v50, %s1650_s26 }
 0x149   : > { %835 = vrot.lane.b32.xlu0 %v726_v51, %s1653_s29 }
 0x14a   : > { %811 = vrot.lane.b32.xlu2 %v725_v50, %s1651_s27  ;;  %789 = vrot.lane.b32.xlu1 %v725_v50, %s1652_s28 }
 0x151   : > { %857 = vrot.lane.b32.xlu0 %v726_v51, %s1654_s30 }
 0x152   : > { %833 = vrot.lane.b32.xlu2 %v725_v50, %s1653_s29  ;;  %1116 = vperm.xlu1 %1592, %v1884_v60  }
 0x159   : > { %879 = vrot.lane.b32.xlu0 %v726_v51, %s1655_s16 }
 0x15a   : > { %855 = vrot.lane.b32.xlu2 %v725_v50, %s1654_s30  ;;  %1593 = vset.pattern.permute.xlu1 %v1641_v61  ;;  %v1922_v61 = vpop.permute.xlu1 %870 }
 0x15b   : > { %1152 = vperm.xlu1 %1593, %v1860_v44  }
 0x161   : > { %901 = vrot.lane.b32.xlu0 %v726_v51, %s1656_s17  ;;  %v840_v51 = vsel %vm501_vm12, 1, %v1640_v2 }
 0x162   : > { %877 = vrot.lane.b32.xlu2 %v725_v50, %s1655_s16  ;;  %v1927_v0 = vpop.permute.xlu1 %892  ;;  %v841_v24 = vperm.slane %v840_v51, 0  ;;  %v842_v6 = vperm.slane %v840_v51, 1 }
 0x163   : > { %1148 = vperm.xlu1 %1593, %v1884_v60  }
 0x164   : > { %vm2066_vm6 = vcmp.eq.s32.totalorder %v841_v24, 1 }
 0x169   : > { %1084 = vperm.xlu0 %1591, %v1884_v60  }
 0x16a   : > { %899 = vrot.lane.b32.xlu2 %v725_v50, %s1656_s17  ;;  %v1933_v3 = vpop.permute.xlu1 %914  ;;  %v820_v50 = vperm.slane %v818_v30, 1 }
 0x16b   : > { %1594 = vset.pattern.permute.xlu1 %v1643_v12  ;;  %v1937_v12 = vpop.permute.xlu0 %782 }
 0x16c   : > { %1184 = vperm.xlu1 %1594, %v1860_v44   ;;  %vm2053_vm13 = vcmp.eq.s32.totalorder %v820_v50, 1 }
 0x172   : > { %v1941_v9 = vpop.permute.xlu1 %1028 }
 0x173   : > { %v1946_v11 = vpop.permute.xlu0 %1120 }
 0x174   : > { %1180 = vperm.xlu1 %1594, %v1884_v60  }
 0x17a   : > { %v1949_v13 = vpop.permute.xlu1 %1046 }
 0x17b   : > { %v761_v14 = vpop.permute.xlu0 %760 }
 0x17c   : > { %1595 = vset.pattern.permute.xlu1 %v1644_v23 }
 0x17d   : > { %1216 = vperm.xlu1 %1595, %v1860_v44  }
 0x183   : > { %v1955_v16 = vpop.permute.xlu0 %1009 }
 0x185   : > { %1212 = vperm.xlu1 %1595, %v1884_v60  }
 0x18d   : > { %1596 = vset.pattern.permute.xlu1 %v1645_v37  ;;  %v1953_v37 = vpop.permute.xlu1 %1041 }
 0x18e   : > { %1248 = vperm.xlu1 %1596, %v1860_v44  }
 0x194   : > { %v770_v23 = vpop.permute.xlu2 %769 }
 0x196   : > { %1244 = vperm.xlu1 %1596, %v1884_v60  }
 0x19c   : > { %v792_v15 = vpop.permute.xlu2 %791 }
 0x19e   : > { %1597 = vset.pattern.permute.xlu1 %v1646_v42  ;;  %v747_v42 = vlaneseq }
 0x19f   : > { %1280 = vperm.xlu1 %1597, %v1860_v44  }
 0x1a0   : > { %v1975_v21 = vand.u32 127, %v747_v42 }
 0x1a2   : > { %vm2512_vm14 = vcmp.lt.s32.totalorder %v1975_v21, 17  ;;  %vm2511_vm2 = vcmp.lt.s32.totalorder %v1975_v21, 16  ;;  %vm2510_vm7 = vcmp.lt.s32.totalorder %v1975_v21, 15  ;;  %vm2513_vm10 = vcmp.lt.s32.totalorder %v1975_v21, 1 }
 0x1a3   : > { %vm2514_vm5 = vcmp.lt.s32.totalorder %v1975_v21, 127 }
 0x1a4   : > { %v1971_v17 = vpop.permute.xlu2 %811 }
 0x1ab   : > { %v744_v18 = vpop.permute.xlu0 %743 }
 0x1ac   : > { %v746_v19 = vpop.permute.xlu1 %745  ;;  %v834_v31 = vpop.permute.xlu2 %833 }
 0x1ad   : > { %v750_v33 = vsel %vm2512_vm14, %v744_v18, %v746_v19  ;;  %v751_v34 = vsel %vm2512_vm14, %v746_v19, %v744_v18  ;;  %vm2075_vm14 = vcmp.eq.s32.totalorder %v863_v27, 1 }
 0x1ae   : > { %v757_v46 = vsel %vm1982_vm15, %v751_v34, 0.0  ;;  %v758_v47 = vsel %vm1990_vm1, %v750_v33, 0.0 }
 0x1af   : > { %v763_v42 = vmul.f32 %v761_v14, %v757_v46  ;;  %v764_v18 = vmul.f32 %v761_v14, %v758_v47  ;;  %v2544_v47 = vmov 0 }
 0x1b0   : > { %v2545_v47 = vsel %vm2053_vm13, 4294967295, %v2544_v47 }
 0x1b1   : > { %v765_v36 = vadd.f32 %v763_v42, %v1890_v54  ;;  %v766_v43 = vadd.f32 %v764_v18, %v1892_v52 }
 0x1b3   : > { %v814_v26 = vpop.permute.xlu0 %813 }
 0x1b4   : > { %v768_v29 = vpop.permute.xlu1 %767  ;;  %v856_v46 = vpop.permute.xlu2 %855 }
 0x1b5   : > { %v772_v48 = vsel %vm2511_vm2, %v768_v29, %v770_v23  ;;  %v773_v49 = vsel %vm2511_vm2, %v770_v23, %v768_v29  ;;  %v864_v29 = vperm.slane %v862_v58, 1  ;;  %vm2515_vm2 = vcmp.lt.s32.totalorder %v1975_v21, 113 }
 0x1b6   : > { %v779_v23 = vsel %vm1999_vm3, %v773_v49, 0.0  ;;  %v780_v19 = vsel %vm2003_vm4, %v772_v48, 0.0 }
 0x1b7   : > { %v785_v30 = vmul.f32 %v1937_v12, %v779_v23  ;;  %v786_v33 = vmul.f32 %v1937_v12, %v780_v19  ;;  %v816_v12 = vsel %vm2513_vm10, %v1971_v17, %v814_v26 }
 0x1b8   : > { %v824_v42 = vsel %vm2053_vm13, %v816_v12, 0.0 }
 0x1b9   : > { %v787_v51 = vadd.f32 %v785_v30, %v765_v36  ;;  %v830_v30 = vmul.f32 %v1909_v55, %v824_v42 }
 0x1bb   : > { %v836_v20 = vpop.permute.xlu0 %835 }
 0x1bc   : > { %v790_v22 = vpop.permute.xlu1 %789  ;;  %v838_v18 = vsel %vm2514_vm5, %v834_v31, %v836_v20  ;;  %v839_v23 = vsel %vm2514_vm5, %v836_v20, %v834_v31  ;;  %vm505_vm5 = vmand %vm499_vm0, %vm501_vm12 }
 0x1bd   : > { %v794_v25 = vsel %vm2510_vm7, %v790_v22, %v792_v15  ;;  %v795_v14 = vsel %vm2510_vm7, %v792_v15, %v790_v22  ;;  %v817_v15 = vsel %vm2513_vm10, %v814_v26, %v1971_v17  ;;  %vm2070_vm7 = vcmp.eq.s32.totalorder %v842_v6, 1 }
 0x1be   : > { %v801_v34 = vsel %vm2023_vm8, %v795_v14, 0.0  ;;  %v802_v35 = vsel %vm2027_vm9, %v794_v25, 0.0  ;;  %v788_v17 = vadd.f32 %v786_v33, %v766_v43  ;;  %vm2079_vm10 = vcmp.eq.s32.totalorder %v864_v29, 1 }
 0x1bf   : > { %v807_v48 = vmul.f32 %v1902_v53, %v801_v34  ;;  %v808_v54 = vmul.f32 %v1902_v53, %v802_v35  ;;  %v2552_v26 = vmov 0  ;;  %v884_v53 = vsel %vm499_vm0, 1, %v1640_v2 }
 0x1c0   : > { %v2553_v26 = vsel %vm2079_vm10, 4294967295, %v2552_v26  ;;  %v823_v58 = vsel %vm2037_vm11, %v817_v15, 0.0  ;;  %v885_v14 = vperm.slane %v884_v53, 0  ;;  %v886_v27 = vperm.slane %v884_v53, 1 }
 0x1c1   : > { %v809_v22 = vadd.f32 %v807_v48, %v787_v51  ;;  %v810_v24 = vadd.f32 %v808_v54, %v788_v17  ;;  %v829_v29 = vmul.f32 %v1909_v55, %v823_v58  ;;  %v845_v31 = vsel %vm2066_vm6, %v838_v18, 0.0  ;;  %v878_v55 = vpop.permute.xlu2 %877 }
 0x1c2   : > { %v846_v20 = vsel %vm2070_vm7, %v839_v23, 0.0  ;;  %vm2113_vm13 = vcmp.eq.s32.totalorder %v885_v14, 1  ;;  %vm2117_vm12 = vcmp.eq.s32.totalorder %v886_v27, 1  ;;  %v906_v43 = vsel %vm505_vm5, 1, %v1640_v2 }
 0x1c3   : > { %v858_v19 = vpop.permute.xlu0 %857  ;;  %v832_v35 = vadd.f32 %v830_v30, %v810_v24  ;;  %v831_v36 = vadd.f32 %v829_v29, %v809_v22  ;;  %v2555_v7 = vsel %vm2113_vm13, 4294967295, %v2554_v7  ;;  %v2557_v8 = vsel %vm2117_vm12, 4294967295, %v2556_v8 }
 0x1c4   : > { %v860_v6 = vsel %vm2515_vm2, %v856_v46, %v858_v19  ;;  %v861_v25 = vsel %vm2515_vm2, %v858_v19, %v856_v46  ;;  %vm2518_vm2 = vcmp.lt.s32.totalorder %v1975_v21, 112  ;;  %v851_v46 = vmul.f32 %v1914_v59, %v845_v31 }
 0x1c5   : > { %v867_v33 = vsel %vm2075_vm14, %v860_v6, 0.0  ;;  %v868_v34 = vsel %vm2079_vm10, %v861_v25, 0.0  ;;  %v852_v12 = vmul.f32 %v1914_v59, %v846_v20  ;;  %v907_v59 = vperm.slane %v906_v43, 0 }
 0x1c6   : > { %v873_v15 = vmul.f32 %v1922_v61, %v867_v33  ;;  %v874_v48 = vmul.f32 %v1922_v61, %v868_v34  ;;  %v853_v51 = vadd.f32 %v851_v46, %v831_v36  ;;  %v908_v18 = vperm.slane %v906_v43, 1 }
 0x1c7   : > { %v854_v17 = vadd.f32 %v852_v12, %v832_v35  ;;  %vm2519_vm0 = vcmp.lt.s32.totalorder %v1975_v21, 111  ;;  %vm2137_vm5 = vcmp.eq.s32.totalorder %v907_v59, 1  ;;  %v2558_v25 = vmov 0 }
 0x1c8   : > { %v875_v23 = vadd.f32 %v873_v15, %v853_v51  ;;  %v2559_v25 = vsel %vm2137_vm5, 4294967295, %v2558_v25  ;;  %v2560_v14 = vmov 0  ;;  %v951_v12 = vmul.f32 %v1841_v38, %v1841_v38 }
 0x1c9   : > { %v876_v19 = vadd.f32 %v874_v48, %v854_v17  ;;  %v900_v27 = vpop.permute.xlu2 %899 }
 0x1cb   : > { %v880_v54 = vpop.permute.xlu0 %879 }
 0x1cc   : > { %v882_v53 = vsel %vm2518_vm2, %v878_v55, %v880_v54  ;;  %v883_v58 = vsel %vm2518_vm2, %v880_v54, %v878_v55  ;;  %vm2141_vm2 = vcmp.eq.s32.totalorder %v908_v18, 1 }
 0x1cd   : > { %v889_v2 = vsel %vm2113_vm13, %v882_v53, 0.0  ;;  %v890_v42 = vsel %vm2117_vm12, %v883_v58, 0.0  ;;  %v2561_v14 = vsel %vm2141_vm2, 4294967295, %v2560_v14 }
 0x1ce   : > { %v895_v61 = vmul.f32 %v1927_v0, %v889_v2  ;;  %v896_v22 = vmul.f32 %v1927_v0, %v890_v42 }
 0x1d0   : > { %v897_v24 = vadd.f32 %v895_v61, %v875_v23  ;;  %v898_v6 = vadd.f32 %v896_v22, %v876_v19 }
 0x1d3   : > { %v902_v29 = vpop.permute.xlu0 %901 }
 0x1d4   : > { %v904_v30 = vsel %vm2519_vm0, %v900_v27, %v902_v29  ;;  %v905_v0 = vsel %vm2519_vm0, %v902_v29, %v900_v27 }
 0x1d5   : > { %v911_v31 = vsel %vm2137_vm5, %v904_v30, 0.0  ;;  %v912_v20 = vsel %vm2141_vm2, %v905_v0, 0.0 }
 0x1d6   : > { %v917_v33 = vmul.f32 %v1933_v3, %v911_v31  ;;  %v918_v34 = vmul.f32 %v1933_v3, %v912_v20  ;;  %v952_v3 = vmul.f32 %v1843_v39, %v1843_v39 }
 0x1d8   : > { %v919_v35 = vadd.f32 %v917_v33, %v897_v24  ;;  %v920_v36 = vadd.f32 %v918_v34, %v898_v6 }
 0x1da   : > { %v923_v55 = vrot.slane %v919_v35, 4  ;;  %v924_v43 = vrot.slane %v920_v36, 4 }
 0x1dc   : > { %927 = vst [vmem:[#allocation2 + $0x18] sm:$0xf0] %v923_v55 }
 0x1dd   : > { %928 = vst [vmem:[#allocation2 + $0x8] sm:$0xf0] %v924_v43 }
 0x1e3   : > { %v2155_v46 = vld [vmem:[#allocation2 + $0x18] sm:$0xff] }
 0x1e4   : > { %v2159_v15 = vld [vmem:[#allocation2 + $0x8] sm:$0xff]  ;;  %v937_v48 = vadd.f32 %v2155_v46, %v1841_v38  ;;  %v953_v54 = vmul.f32 %v2155_v46, %v2155_v46 }
 0x1e5   : > { %v944_v51 = vadd.f32 %v2159_v15, %v1843_v39  ;;  %v954_v17 = vmul.f32 %v2159_v15, %v2159_v15 }
 0x1e6   : > { %v938_v53 = vrot.slane %v937_v48, 4  ;;  %v955_v58 = vadd.f32 %v953_v54, %v951_v12 }
 0x1e7   : > { %v945_v2 = vrot.slane %v944_v51, 4  ;;  %v962_v42 = vadd.f32 %v954_v17, %v952_v3 }
 0x1e8   : > { %v939_v59 = vadd.f32 %v938_v53, %v937_v48  ;;  %v956_v18 = vrot.slane %v955_v58, 4 }
 0x1e9   : > { %v946_v23 = vadd.f32 %v945_v2, %v944_v51  ;;  %v963_v19 = vrot.slane %v962_v42, 4 }
 0x1ea   : > { %v940_v61 = vrot.slane %v939_v59, 2  ;;  %v957_v22 = vadd.f32 %v956_v18, %v955_v58 }
 0x1eb   : > { %v947_v24 = vrot.slane %v946_v23, 2  ;;  %v964_v6 = vadd.f32 %v963_v19, %v962_v42 }
 0x1ec   : > { %v941_v27 = vadd.f32 %v940_v61, %v939_v59  ;;  %v958_v29 = vrot.slane %v957_v22, 2 }
 0x1ed   : > { %v948_v30 = vadd.f32 %v947_v24, %v946_v23  ;;  %v965_v0 = vrot.slane %v964_v6, 2 }
 0x1ee   : > { %v942_v31 = vrot.slane %v941_v27, 1  ;;  %v959_v20 = vadd.f32 %v958_v29, %v957_v22 }
 0x1ef   : > { %v949_v33 = vrot.slane %v948_v30, 1  ;;  %v966_v34 = vadd.f32 %v965_v0, %v964_v6 }
 0x1f0   : > { %v943_v35 = vadd.f32 %v942_v31, %v941_v27  ;;  %v960_v36 = vrot.slane %v959_v20, 1 }
 0x1f1   : > { %v950_v55 = vadd.f32 %v949_v33, %v948_v30  ;;  %v967_v43 = vrot.slane %v966_v34, 1 }
 0x1f2   : > { %v961_v12 = vadd.f32 %v960_v36, %v959_v20  ;;  %v969_v48 = vmul.f32 0.0625, %v943_v35 }
 0x1f3   : > { %v968_v54 = vadd.f32 %v967_v43, %v966_v34  ;;  %v970_v3 = vmul.f32 0.0625, %v950_v55 }
 0x1f4   : > { %v971_v51 = vmul.f32 0.0625, %v961_v12  ;;  %v973_v17 = vmul.f32 %v969_v48, %v969_v48  ;;  %v1001_v20 = vsub.f32 %v2155_v46, %v969_v48  ;;  %v999_v46 = vsub.f32 %v1841_v38, %v969_v48 }
 0x1f5   : > { %v972_v53 = vmul.f32 0.0625, %v968_v54  ;;  %v974_v58 = vmul.f32 %v970_v3, %v970_v3  ;;  %v1002_v34 = vsub.f32 %v2159_v15, %v970_v3  ;;  %v1000_v35 = vsub.f32 %v1843_v39, %v970_v3 }
 0x1f6   : > { %v975_v2 = vsub.f32 %v971_v51, %v973_v17 }
 0x1f7   : > { %v976_v42 = vsub.f32 %v972_v53, %v974_v58 }
 0x1f8   : > { %v977_v59 = vadd.f32 1e-06, %v975_v2 }
 0x1f9   : > { %v978_v18 = vadd.f32 1e-06, %v976_v42 }
 0x1fa   : > { %1612 = vrsqrt.f32 %v977_v59  ;;  %vm985_vm5 = vweird.f32 %v977_v59 }
 0x1fb   : > { %1614 = vrsqrt.f32 %v978_v18  ;;  %vm995_vm12 = vweird.f32 %v978_v18 }
 0x200   : > { %v1613_v23 = vpop.eup %1612 }
 0x201   : > { %v1615_v19 = vpop.eup %1614  ;;  %v980_v61 = vmul.f32 %v1613_v23, %v977_v59  ;;  %vm986_vm0 = vweird.f32 %v1613_v23 }
 0x202   : > { %v990_v22 = vmul.f32 %v1615_v19, %v978_v18  ;;  %vm996_vm2 = vweird.f32 %v1615_v19  ;;  %vm987_vm13 = vmor %vm985_vm5, %vm986_vm0 }
 0x203   : > { %v981_v24 = vmul.f32 %v1613_v23, %v980_v61  ;;  %vm997_vm10 = vmor %vm995_vm12, %vm996_vm2  ;;  %vm2562_vm2 = vcmp.lt.s32.totalorder %v1975_v21, 17 }
 0x204   : > { %v991_v6 = vmul.f32 %v1615_v19, %v990_v22  ;;  %v1085_v22 = vpop.permute.xlu0 %1084  ;;  %vm2565_vm12 = vmmov %vm2562_vm2 }
 0x205   : > { %v982_v27 = vmul.f32 0.5, %v981_v24  ;;  %v1428_v24 = vld [vmem:[%s2507_s14] sm:$0xff] }
 0x206   : > { %v992_v29 = vmul.f32 0.5, %v991_v6 }
 0x207   : > { %v983_v30 = vsub.f32 1.5, %v982_v27 }
 0x208   : > { %v993_v0 = vsub.f32 1.5, %v992_v29 }
 0x209   : > { %v984_v31 = vmul.f32 %v1613_v23, %v983_v30 }
 0x20a   : > { %v994_v33 = vmul.f32 %v1615_v19, %v993_v0 }
 0x20b   : > { %v988_v36 = vsel %vm987_vm13, %v1613_v23, %v984_v31  ;;  %vm2564_vm13 = vmmov %vm2562_vm2 }
 0x20c   : > { %v998_v55 = vsel %vm997_vm10, %v1615_v19, %v994_v33  ;;  %v1005_v43 = vmul.f32 %v1001_v20, %v988_v36  ;;  %v1003_v3 = vmul.f32 %v999_v46, %v988_v36  ;;  %vm2563_vm10 = vmmov %vm2562_vm2 }
 0x20d   : > { %v1006_v12 = vmul.f32 %v1002_v34, %v998_v55  ;;  %v1004_v54 = vmul.f32 %v1000_v35, %v998_v55 }
 0x20e   : > { %v1019_v51 = vmul.f32 %v1916_v62, %v1005_v43  ;;  %v1017_v38 = vmul.f32 %v1955_v16, %v1003_v3 }
 0x20f   : > { %v1020_v17 = vmul.f32 %v1916_v62, %v1006_v12  ;;  %v1018_v53 = vmul.f32 %v1955_v16, %v1004_v54 }
 0x210   : > { %v2179_v58 = vadd.f32 %v1941_v9, %v1019_v51  ;;  %v1031_v62 = vadd.f32 %v1924_v63, %v1017_v38 }
 0x211   : > { %v2182_v15 = vadd.f32 %v1941_v9, %v1020_v17  ;;  %v2185_v39 = vadd.f32 %v1924_v63, %v1018_v53  ;;  %v2200_v9 = vpop.permute.xlu1 %1116 }
 0x212   : > { %1069 = vrot.lane.b32.xlu2 %v2179_v58, %s1649_s25  ;;  %v1051_v20 = vmul.f32 %v1949_v13, %v2179_v58  ;;  %v1049_v35 = vmul.f32 %v1953_v37, %v1031_v62 }
 0x213   : > { %1073 = vrot.lane.b32.xlu0 %v2182_v15, %s1649_s25  ;;  %1071 = vrot.lane.b32.xlu1 %v2185_v39, %s1649_s25  ;;  %v1052_v12 = vmul.f32 %v1949_v13, %v2182_v15  ;;  %v1050_v54 = vmul.f32 %v1953_v37, %v2185_v39 }
 0x214   : > { %v1063_v37 = vadd.f32 %v1944_v10, %v1049_v35 }
 0x215   : > { %v1066_v38 = vadd.f32 %v1929_v1, %v1052_v12  ;;  %v1064_v13 = vadd.f32 %v1944_v10, %v1050_v54 }
 0x219   : > { %v2212_v63 = vpop.permute.xlu1 %1152 }
 0x21a   : > { %1103 = vrot.lane.b32.xlu2 %v2185_v39, %s1650_s26 }
 0x21b   : > { %1105 = vrot.lane.b32.xlu1 %v2182_v15, %s1650_s26  ;;  %1067 = vrot.lane.b32.xlu0 %v1031_v62, %s1649_s25 }
 0x221   : > { %v2219_v16 = vpop.permute.xlu1 %1148 }
 0x222   : > { %1137 = vrot.lane.b32.xlu2 %v2182_v15, %s1652_s28 }
 0x223   : > { %1099 = vrot.lane.b32.xlu1 %v1031_v62, %s1650_s26  ;;  %1101 = vrot.lane.b32.xlu0 %v2179_v58, %s1650_s26 }
 0x229   : > { %v2226_v48 = vpop.permute.xlu1 %1184 }
 0x22a   : > { %1131 = vrot.lane.b32.xlu2 %v1031_v62, %s1652_s28 }
 0x22b   : > { %1133 = vrot.lane.b32.xlu1 %v2179_v58, %s1652_s28  ;;  %1135 = vrot.lane.b32.xlu0 %v2185_v39, %s1652_s28  ;;  %s1551_s28 = sshll.u32 %s2602_s19, 4 }
 0x231   : > { %v2232_v2 = vpop.permute.xlu1 %1180 }
 0x232   : > { %1165 = vrot.lane.b32.xlu2 %v2179_v58, %s1651_s27 }
 0x233   : > { %1169 = vrot.lane.b32.xlu0 %v2182_v15, %s1651_s27  ;;  %1276 = vperm.xlu1 %1597, %v1884_v60  }
 0x23a   : > { %1163 = vrot.lane.b32.xlu2 %v1031_v62, %s1651_s27 }
 0x23b   : > { %1167 = vrot.lane.b32.xlu0 %v2185_v39, %s1651_s27  ;;  %1598 = vset.pattern.permute.xlu1 %v1648_v45 }
 0x23c   : > { %1312 = vperm.xlu1 %1598, %v1860_v44   ;;  %v2241_v44 = vpop.permute.xlu1 %1216 }
 0x242   : > { %1197 = vrot.lane.b32.xlu2 %v2179_v58, %s1653_s29 }
 0x243   : > { %1201 = vrot.lane.b32.xlu0 %v2182_v15, %s1653_s29 }
 0x244   : > { %v2246_v45 = vpop.permute.xlu1 %1212 }
 0x24a   : > { %1195 = vrot.lane.b32.xlu2 %v1031_v62, %s1653_s29 }
 0x24b   : > { %1199 = vrot.lane.b32.xlu0 %v2185_v39, %s1653_s29 }
 0x24c   : > { %v2252_v42 = vpop.permute.xlu1 %1248 }
 0x252   : > { %1229 = vrot.lane.b32.xlu2 %v2179_v58, %s1654_s30 }
 0x253   : > { %1233 = vrot.lane.b32.xlu0 %v2182_v15, %s1654_s30 }
 0x254   : > { %v2257_v18 = vpop.permute.xlu1 %1244 }
 0x25a   : > { %1227 = vrot.lane.b32.xlu2 %v1031_v62, %s1654_s30 }
 0x25b   : > { %1231 = vrot.lane.b32.xlu0 %v2185_v39, %s1654_s30 }
 0x25c   : > { %v2266_v19 = vpop.permute.xlu1 %1280 }
 0x262   : > { %1261 = vrot.lane.b32.xlu2 %v2179_v58, %s1655_s16 }
 0x263   : > { %1265 = vrot.lane.b32.xlu0 %v2182_v15, %s1655_s16 }
 0x26a   : > { %1259 = vrot.lane.b32.xlu2 %v1031_v62, %s1655_s16 }
 0x26b   : > { %1263 = vrot.lane.b32.xlu0 %v2185_v39, %s1655_s16  ;;  %s494_s16 = scalar_lea.vmem %s2508_s15, %s1551_s28 }
 0x26c   : > { %v1070_v59 = vpop.permute.xlu2 %1069 }
 0x272   : > { %1293 = vrot.lane.b32.xlu2 %v2179_v58, %s1656_s17 }
 0x273   : > { %1297 = vrot.lane.b32.xlu0 %v2182_v15, %s1656_s17 }
 0x274   : > { %v1104_v23 = vpop.permute.xlu2 %1103 }
 0x27a   : > { %1291 = vrot.lane.b32.xlu2 %v1031_v62, %s1656_s17  ;;  %v1065_v62 = vadd.f32 %v1929_v1, %v1051_v20 }
 0x27b   : > { %1295 = vrot.lane.b32.xlu0 %v2185_v39, %s1656_s17 }
 0x27c   : > { %v1138_v61 = vpop.permute.xlu2 %1137 }
 0x282   : > { %1308 = vperm.xlu2 %1599, %v1884_v60  }
 0x283   : > { %1431 = vperm.xlu0 %1591, %v1428_v24  }
 0x284   : > { %v1132_v6 = vpop.permute.xlu2 %1131 }
 0x285   : > { %v1072_v27 = vpop.permute.xlu1 %1071  ;;  %v1074_v29 = vpop.permute.xlu0 %1073 }
 0x286   : > { %v1076_v30 = vsel %vm2562_vm2, %v1070_v59, %v1074_v29  ;;  %v1078_v0 = vsel %vm2563_vm10, %v1074_v29, %v1070_v59  ;;  %vm2570_vm2 = vcmp.lt.s32.totalorder %v1975_v21, 15 }
 0x287   : > { %v1081_v60 = vsel %vm1982_vm15, %v1078_v0, 0.0  ;;  %v1082_v36 = vsel %vm1990_vm1, %v1076_v30, 0.0  ;;  %vm2573_vm10 = vmmov %vm2570_vm2 }
 0x288   : > { %v1093_v58 = vmul.f32 %v1935_v4, %v1081_v60  ;;  %v1094_v3 = vmul.f32 %v1935_v4, %v1082_v36 }
 0x28a   : > { %v1097_v15 = vadd.f32 %v1093_v58, %v1065_v62  ;;  %v1098_v28 = vadd.f32 %v1094_v3, %v1066_v38 }
 0x28c   : > { %v2276_v31 = vpop.permute.xlu2 %1165 }
 0x28d   : > { %v1106_v33 = vpop.permute.xlu1 %1105  ;;  %v1068_v34 = vpop.permute.xlu0 %1067 }
 0x28e   : > { %v1075_v55 = vsel %vm2564_vm13, %v1068_v34, %v1072_v27  ;;  %v1077_v43 = vsel %vm2565_vm12, %v1072_v27, %v1068_v34  ;;  %vm2576_vm13 = vnez %v2545_v47  ;;  %vm2577_vm12 = vcmp.lt.s32.totalorder %v1975_v21, 127 }
 0x28f   : > { %v1079_v51 = vsel %vm1982_vm15, %v1077_v43, 0.0  ;;  %v1080_v17 = vsel %vm1990_vm1, %v1075_v55, 0.0  ;;  %vm2566_vm15 = vcmp.lt.s32.totalorder %v1975_v21, 16 }
 0x290   : > { %v1091_v53 = vmul.f32 %v1085_v22, %v1079_v51  ;;  %v1092_v46 = vmul.f32 %v1085_v22, %v1080_v17  ;;  %vm2567_vm1 = vmmov %vm2566_vm15 }
 0x291   : > { %vm2568_vm0 = vmmov %vm2567_vm1 }
 0x292   : > { %v1095_v39 = vadd.f32 %v1091_v53, %v1063_v37  ;;  %v1096_v59 = vadd.f32 %v1092_v46, %v1064_v13  ;;  %vm2569_vm5 = vmmov %vm2568_vm0 }
 0x294   : > { %v2303_v27 = vpop.permute.xlu2 %1163 }
 0x295   : > { %v1100_v32 = vpop.permute.xlu1 %1099  ;;  %v1102_v24 = vpop.permute.xlu0 %1101 }
 0x296   : > { %v1107_v22 = vsel %vm2566_vm15, %v1100_v32, %v1104_v23  ;;  %v1109_v4 = vsel %vm2567_vm1, %v1104_v23, %v1100_v32  ;;  %v1108_v1 = vsel %vm2568_vm0, %v1102_v24, %v1106_v33  ;;  %v1110_v10 = vsel %vm2569_vm5, %v1106_v33, %v1102_v24  ;;  %vm2578_vm15 = vmmov %vm2577_vm12 }
 0x297   : > { %v1111_v29 = vsel %vm1999_vm3, %v1109_v4, 0.0  ;;  %v1112_v30 = vsel %vm2003_vm4, %v1107_v22, 0.0  ;;  %v1113_v0 = vsel %vm1999_vm3, %v1110_v10, 0.0  ;;  %v1114_v20 = vsel %vm2003_vm4, %v1108_v1, 0.0  ;;  %vm2571_vm3 = vmmov %vm2570_vm2 }
 0x298   : > { %v1123_v23 = vmul.f32 %v2200_v9, %v1111_v29  ;;  %v1124_v34 = vmul.f32 %v2200_v9, %v1112_v30  ;;  %v1125_v35 = vmul.f32 %v1946_v11, %v1113_v0  ;;  %v1126_v33 = vmul.f32 %v1946_v11, %v1114_v20  ;;  %vm2572_vm4 = vmmov %vm2570_vm2 }
 0x299   : > { %vm2579_vm1 = vcmp.lt.s32.totalorder %v1975_v21, 113 }
 0x29a   : > { %v1127_v60 = vadd.f32 %v1123_v23, %v1095_v39  ;;  %v1128_v36 = vadd.f32 %v1124_v34, %v1096_v59  ;;  %v1129_v55 = vadd.f32 %v1125_v35, %v1097_v15  ;;  %v1130_v43 = vadd.f32 %v1126_v33, %v1098_v28  ;;  %vm2580_vm0 = vmmov %vm2579_vm1 }
 0x29c   : > { %v1198_v58 = vpop.permute.xlu2 %1197 }
 0x29d   : > { %v1134_v12 = vpop.permute.xlu1 %1133  ;;  %v1136_v54 = vpop.permute.xlu0 %1135 }
 0x29e   : > { %v1140_v40 = vsel %vm2570_vm2, %v1134_v12, %v1138_v61  ;;  %v1142_v41 = vsel %vm2571_vm3, %v1138_v61, %v1134_v12  ;;  %v1139_v51 = vsel %vm2572_vm4, %v1132_v6, %v1136_v54  ;;  %v1141_v9 = vsel %vm2573_vm10, %v1136_v54, %v1132_v6 }
 0x29f   : > { %v1145_v11 = vsel %vm2023_vm8, %v1142_v41, 0.0  ;;  %v1146_v17 = vsel %vm2027_vm9, %v1140_v40, 0.0  ;;  %v1143_v53 = vsel %vm2023_vm8, %v1141_v9, 0.0  ;;  %v1144_v46 = vsel %vm2027_vm9, %v1139_v51, 0.0 }
 0x2a0   : > { %v1157_v61 = vmul.f32 %v2212_v63, %v1145_v11  ;;  %v1158_v3 = vmul.f32 %v2212_v63, %v1146_v17  ;;  %v1155_v38 = vmul.f32 %v2219_v16, %v1143_v53  ;;  %v1156_v6 = vmul.f32 %v2219_v16, %v1144_v46 }
 0x2a1   : > { %vm2574_vm8 = vcmp.lt.s32.totalorder %v1975_v21, 1  ;;  %vm2583_vm3 = vnez %v2553_v26  ;;  %vm2584_vm4 = vcmp.lt.s32.totalorder %v1975_v21, 112 }
 0x2a2   : > { %v1161_v62 = vadd.f32 %v1157_v61, %v1129_v55  ;;  %v1162_v13 = vadd.f32 %v1158_v3, %v1130_v43  ;;  %v2345_v37 = vadd.f32 %v1155_v38, %v1127_v60  ;;  %v2347_v15 = vadd.f32 %v1156_v6, %v1128_v36  ;;  %vm2575_vm9 = vmmov %vm2574_vm8 }
 0x2a3   : > { %vm2581_vm5 = vmmov %vm2574_vm8 }
 0x2a4   : > { %v1196_v28 = vpop.permute.xlu2 %1195  ;;  %vm2582_vm2 = vmmov %vm2581_vm5 }
 0x2a5   : > { %v1170_v56 = vpop.permute.xlu0 %1169  ;;  %v1277_v54 = vpop.permute.xlu1 %1276  ;;  %vm2585_vm10 = vmmov %vm2584_vm4 }
 0x2a6   : > { %v1172_v16 = vsel %vm2574_vm8, %v2276_v31, %v1170_v56  ;;  %v1174_v29 = vsel %vm2575_vm9, %v1170_v56, %v2276_v31  ;;  %vm2586_vm8 = vnez %v2555_v7  ;;  %vm2587_vm9 = vnez %v2557_v8 }
 0x2a7   : > { %v1177_v30 = vsel %vm2037_vm11, %v1174_v29, 0.0  ;;  %v1178_v0 = vsel %vm2576_vm13, %v1172_v16, 0.0 }
 0x2a8   : > { %v1189_v31 = vmul.f32 %v2226_v48, %v1177_v30  ;;  %v1190_v33 = vmul.f32 %v2226_v48, %v1178_v0 }
 0x2aa   : > { %v1193_v53 = vadd.f32 %v1189_v31, %v1161_v62 }
 0x2ac   : > { %v1230_v57 = vpop.permute.xlu2 %1229 }
 0x2ad   : > { %v1168_v39 = vpop.permute.xlu0 %1167 }
 0x2ae   : > { %v1171_v43 = vsel %vm2581_vm5, %v2303_v27, %v1168_v39  ;;  %v1173_v12 = vsel %vm2582_vm2, %v1168_v39, %v2303_v27  ;;  %v1194_v27 = vadd.f32 %v1190_v33, %v1162_v13  ;;  %v1313_v16 = vpop.permute.xlu1 %1312  ;;  %vm2595_vm5 = vnez %v2559_v25 }
 0x2af   : > { %v1175_v46 = vsel %vm2037_vm11, %v1173_v12, 0.0  ;;  %vm2589_vm11 = vmmov %vm2580_vm0 }
 0x2b0   : > { %v1187_v56 = vmul.f32 %v2232_v2, %v1175_v46 }
 0x2b4   : > { %v1228_v24 = vpop.permute.xlu2 %1227 }
 0x2b5   : > { %v1202_v59 = vpop.permute.xlu0 %1201 }
 0x2b6   : > { %v1204_v20 = vsel %vm2577_vm12, %v1198_v58, %v1202_v59  ;;  %v1206_v23 = vsel %vm2578_vm15, %v1202_v59, %v1198_v58  ;;  %v1176_v58 = vsel %vm2576_vm13, %v1171_v43, 0.0  ;;  %vm2588_vm15 = vmmov %vm2577_vm12 }
 0x2b7   : > { %v1209_v60 = vsel %vm2066_vm6, %v1204_v20, 0.0  ;;  %v1210_v36 = vsel %vm2070_vm7, %v1206_v23, 0.0  ;;  %vm2590_vm13 = vmmov %vm2580_vm0  ;;  %v1188_v39 = vmul.f32 %v2232_v2, %v1176_v58 }
 0x2b8   : > { %v1221_v11 = vmul.f32 %v2241_v44, %v1209_v60  ;;  %v1222_v17 = vmul.f32 %v2241_v44, %v1210_v36  ;;  %v1191_v36 = vadd.f32 %v1187_v56, %v2345_v37 }
 0x2ba   : > { %v1225_v62 = vadd.f32 %v1221_v11, %v1193_v53  ;;  %v1226_v13 = vadd.f32 %v1222_v17, %v1194_v27 }
 0x2bc   : > { %v1262_v4 = vpop.permute.xlu2 %1261 }
 0x2bd   : > { %v1200_v32 = vpop.permute.xlu0 %1199 }
 0x2be   : > { %v1203_v44 = vsel %vm2577_vm12, %v1196_v28, %v1200_v32  ;;  %v1205_v5 = vsel %vm2588_vm15, %v1200_v32, %v1196_v28  ;;  %vm2599_vm12 = vcmask 130048  }
 0x2bf   : > { %v1208_v28 = vsel %vm2070_vm7, %v1205_v5, 0.0  ;;  %vm2594_vm7 = vmmov %vm2584_vm4 }
 0x2c0   : > { %vm2600_vm15 = vmmov %vm2599_vm12 }
 0x2c4   : > { %v1260_v1 = vpop.permute.xlu2 %1259 }
 0x2c5   : > { %v1234_v22 = vpop.permute.xlu0 %1233 }
 0x2c6   : > { %v1236_v34 = vsel %vm2579_vm1, %v1230_v57, %v1234_v22  ;;  %v1238_v35 = vsel %vm2580_vm0, %v1234_v22, %v1230_v57  ;;  %v1207_v22 = vsel %vm2066_vm6, %v1203_v44, 0.0  ;;  %vm2591_vm1 = vcmp.lt.s32.totalorder %v1975_v21, 111  ;;  %vm2593_vm6 = vmmov %vm2584_vm4 }
 0x2c7   : > { %v1241_v48 = vsel %vm2075_vm14, %v1236_v34, 0.0  ;;  %v1242_v41 = vsel %vm2583_vm3, %v1238_v35, 0.0  ;;  %vm2592_vm0 = vmmov %vm2591_vm1  ;;  %v1219_v34 = vmul.f32 %v2246_v45, %v1207_v22  ;;  %v1220_v35 = vmul.f32 %v2246_v45, %v1208_v28 }
 0x2c8   : > { %v1253_v61 = vmul.f32 %v2252_v42, %v1241_v48  ;;  %v1254_v3 = vmul.f32 %v2252_v42, %v1242_v41  ;;  %vm2597_vm2 = vmmov %vm2592_vm0 }
 0x2c9   : > { %v1223_v8 = vadd.f32 %v1219_v34, %v1191_v36 }
 0x2ca   : > { %v1257_v32 = vadd.f32 %v1253_v61, %v1225_v62 }
 0x2cc   : > { %v1294_v55 = vpop.permute.xlu2 %1293 }
 0x2cd   : > { %v1232_v63 = vpop.permute.xlu0 %1231 }
 0x2ce   : > { %v1235_v47 = vsel %vm2589_vm11, %v1228_v24, %v1232_v63  ;;  %v1237_v42 = vsel %vm2590_vm13, %v1232_v63, %v1228_v24 }
 0x2cf   : > { %v1239_v24 = vsel %vm2075_vm14, %v1235_v47, 0.0  ;;  %v1240_v2 = vsel %vm2583_vm3, %v1237_v42, 0.0  ;;  %vm2596_vm14 = vnez %v2561_v14  ;;  %vm2598_vm3 = vmmov %vm2592_vm0 }
 0x2d0   : > { %v1251_v43 = vmul.f32 %v2257_v18, %v1239_v24  ;;  %v1252_v12 = vmul.f32 %v2257_v18, %v1240_v2 }
 0x2d2   : > { %v1255_v17 = vadd.f32 %v1251_v43, %v1223_v8 }
 0x2d4   : > { %v1292_v63 = vpop.permute.xlu2 %1291 }
 0x2d5   : > { %v1266_v10 = vpop.permute.xlu0 %1265 }
 0x2d6   : > { %v1268_v51 = vsel %vm2584_vm4, %v1262_v4, %v1266_v10  ;;  %v1270_v9 = vsel %vm2585_vm10, %v1266_v10, %v1262_v4  ;;  %v1258_v4 = vadd.f32 %v1254_v3, %v1226_v13 }
 0x2d7   : > { %v1273_v38 = vsel %vm2586_vm8, %v1268_v51, 0.0  ;;  %v1274_v6 = vsel %vm2587_vm9, %v1270_v9, 0.0 }
 0x2d8   : > { %v1285_v57 = vmul.f32 %v2266_v19, %v1273_v38  ;;  %v1286_v59 = vmul.f32 %v2266_v19, %v1274_v6 }
 0x2da   : > { %v1289_v30 = vadd.f32 %v1285_v57, %v1257_v32  ;;  %v1290_v0 = vadd.f32 %v1286_v59, %v1258_v4 }
 0x2dc   : > { %v1309_v11 = vpop.permute.xlu2 %1308 }
 0x2dd   : > { %v1264_v40 = vpop.permute.xlu0 %1263 }
 0x2de   : > { %v1267_v49 = vsel %vm2593_vm6, %v1260_v1, %v1264_v40  ;;  %v1269_v29 = vsel %vm2594_vm7, %v1264_v40, %v1260_v1 }
 0x2df   : > { %v1271_v31 = vsel %vm2586_vm8, %v1267_v49, 0.0  ;;  %v1272_v1 = vsel %vm2587_vm9, %v1269_v29, 0.0 }
 0x2e0   : > { %v1283_v48 = vmul.f32 %v1277_v54, %v1271_v31  ;;  %v1284_v41 = vmul.f32 %v1277_v54, %v1272_v1 }
 0x2e2   : > { %v1287_v61 = vadd.f32 %v1283_v48, %v1255_v17 }
 0x2e5   : > { %v1298_v10 = vpop.permute.xlu0 %1297 }
 0x2e6   : > { %v1300_v19 = vsel %vm2591_vm1, %v1294_v55, %v1298_v10  ;;  %v1302_v52 = vsel %vm2592_vm0, %v1298_v10, %v1294_v55  ;;  %v1192_v55 = vadd.f32 %v1188_v39, %v2347_v15 }
 0x2e7   : > { %v1305_v50 = vsel %vm2595_vm5, %v1300_v19, 0.0  ;;  %v1306_v26 = vsel %vm2596_vm14, %v1302_v52, 0.0 }
 0x2e8   : > { %v1317_v20 = vmul.f32 %v1313_v16, %v1305_v50  ;;  %v1318_v23 = vmul.f32 %v1313_v16, %v1306_v26  ;;  %v1224_v40 = vadd.f32 %v1220_v35, %v1192_v55 }
 0x2ea   : > { %v2437_v33 = vadd.f32 %v1317_v20, %v1289_v30  ;;  %v2439_v60 = vadd.f32 %v1318_v23, %v1290_v0  ;;  %v1256_v53 = vadd.f32 %v1252_v12, %v1224_v40 }
 0x2ec   : > { %v2446_v45 = vmul.f32 0.70710677, %v2437_v33  ;;  %v2449_v7 = vmul.f32 0.70710677, %v2439_v60  ;;  %v1288_v3 = vadd.f32 %v1284_v41, %v1256_v53 }
 0x2ed   : > { %v1296_v51 = vpop.permute.xlu0 %1295 }
 0x2ee   : > { %v1329_v9 = vand.u32 2147483647, %v2446_v45  ;;  %v1330_v37 = vand.u32 2147483647, %v2449_v7  ;;  %v1299_v15 = vsel %vm2597_vm2, %v1292_v63, %v1296_v51  ;;  %v1301_v18 = vsel %vm2598_vm3, %v1296_v51, %v1292_v63 }
 0x2ef   : > { %v1303_v27 = vsel %vm2595_vm5, %v1299_v15, 0.0  ;;  %v1304_v54 = vsel %vm2596_vm14, %v1301_v18, 0.0  ;;  %vm1405_vm4 = vcmp.ge.f32.partialorder %v2446_v45, 0.0  ;;  %vm1406_vm10 = vcmp.ge.f32.partialorder %v2449_v7, 0.0 }
 0x2f0   : > { %v1333_v46 = vmul.f32 0.3275911, %v1329_v9  ;;  %v1334_v58 = vmul.f32 0.3275911, %v1330_v37  ;;  %v1315_v38 = vmul.f32 %v1309_v11, %v1303_v27  ;;  %v1316_v6 = vmul.f32 %v1309_v11, %v1304_v54 }
 0x2f1   : > { %v1381_v57 = vsub.f32 0.0, %v1329_v9  ;;  %v1382_v22 = vsub.f32 0.0, %v1330_v37 }
 0x2f2   : > { %v1337_v44 = vadd.f32 1.0, %v1333_v46  ;;  %v1338_v5 = vadd.f32 1.0, %v1334_v58  ;;  %v2461_v62 = vadd.f32 %v1315_v38, %v1287_v61  ;;  %v2463_v21 = vadd.f32 %v1316_v6, %v1288_v3 }
 0x2f3   : > { %v1385_v16 = vmul.f32 %v1381_v57, %v1329_v9  ;;  %v1386_v63 = vmul.f32 %v1382_v22, %v1330_v37 }
 0x2f4   : > { %1616 = vrcp.f32 %v1337_v44  ;;  %v2466_v25 = vmul.f32 0.70710677, %v2461_v62  ;;  %v2469_v14 = vmul.f32 0.70710677, %v2463_v21 }
 0x2f5   : > { %1618 = vrcp.f32 %v1338_v5  ;;  %v1391_v49 = vmul.f32 1.442695, %v1385_v16  ;;  %v1393_v30 = vmul.f32 1.442695, %v1386_v63 }
 0x2f6   : > { %v1327_v13 = vand.u32 2147483647, %v2466_v25  ;;  %v1328_v47 = vand.u32 2147483647, %v2469_v14  ;;  %vm1403_vm8 = vcmp.ge.f32.partialorder %v2466_v25, 0.0  ;;  %vm1404_vm9 = vcmp.ge.f32.partialorder %v2469_v14, 0.0  ;;  %v1432_v25 = vpop.permute.xlu0 %1431 }
 0x2f8   : > { %v1331_v42 = vmul.f32 0.3275911, %v1327_v13  ;;  %v1332_v56 = vmul.f32 0.3275911, %v1328_v47  ;;  %v1379_v0 = vsub.f32 0.0, %v1327_v13  ;;  %v1380_v23 = vsub.f32 0.0, %v1328_v47 }
 0x2fa   : > { %v1617_v39 = vpop.eup %1616  ;;  %v1335_v28 = vadd.f32 1.0, %v1331_v42  ;;  %v1336_v32 = vadd.f32 1.0, %v1332_v56  ;;  %v1383_v12 = vmul.f32 %v1379_v0, %v1327_v13  ;;  %v1384_v40 = vmul.f32 %v1380_v23, %v1328_v47 }
 0x2fb   : > { %v1619_v59 = vpop.eup %1618  ;;  %v1345_v4 = vmul.f32 1.0614054, %v1617_v39 }
 0x2fc   : > { %v1346_v10 = vmul.f32 1.0614054, %v1619_v59  ;;  %1620 = vrcp.f32 %v1335_v28  ;;  %v1387_v11 = vmul.f32 1.442695, %v1383_v12  ;;  %v1389_v27 = vmul.f32 1.442695, %v1384_v40 }
 0x2fd   : > { %1622 = vrcp.f32 %v1336_v32  ;;  %v1349_v24 = vadd.f32 -1.4531521, %v1345_v4  ;;  %v1417_v32 = vmul.f32 0.5, %v2437_v33 }
 0x2fe   : > { %v1350_v2 = vadd.f32 -1.4531521, %v1346_v10  ;;  %1624 = vpow2.f32 %v1391_v49 }
 0x2ff   : > { %v1353_v19 = vmul.f32 %v1617_v39, %v1349_v24  ;;  %1626 = vpow2.f32 %v1393_v30 }
 0x300   : > { %v1354_v52 = vmul.f32 %v1619_v59, %v1350_v2  ;;  %1628 = vpow2.f32 %v1387_v11  ;;  %v1418_v2 = vmul.f32 0.5, %v2439_v60  ;;  %v1415_v60 = vmul.f32 0.5, %v2461_v62 }
 0x301   : > { %v1357_v29 = vadd.f32 1.4214138, %v1353_v19  ;;  %1630 = vpow2.f32 %v1389_v27 }
 0x302   : > { %v1358_v50 = vadd.f32 1.4214138, %v1354_v52  ;;  %v1621_v26 = vpop.eup %1620 }
 0x303   : > { %v1623_v20 = vpop.eup %1622  ;;  %v1361_v34 = vmul.f32 %v1617_v39, %v1357_v29  ;;  %v1343_v31 = vmul.f32 1.0614054, %v1621_v26 }
 0x304   : > { %v1362_v35 = vmul.f32 %v1619_v59, %v1358_v50  ;;  %v1344_v1 = vmul.f32 1.0614054, %v1623_v20  ;;  %v1625_v53 = vpop.eup %1624 }
 0x305   : > { %v1365_v36 = vadd.f32 -0.28449672, %v1361_v34  ;;  %v1347_v43 = vadd.f32 -1.4531521, %v1343_v31  ;;  %v1627_v61 = vpop.eup %1626  ;;  %v1416_v34 = vmul.f32 0.5, %v2463_v21 }
 0x306   : > { %v1366_v55 = vadd.f32 -0.28449672, %v1362_v35  ;;  %v1348_v8 = vadd.f32 -1.4531521, %v1344_v1  ;;  %v1629_v16 = vpop.eup %1628  ;;  %v1427_v1 = vld [vmem:[%s2506_s13] sm:$0xff] }
 0x307   : > { %v1369_v48 = vmul.f32 %v1617_v39, %v1365_v36  ;;  %v1351_v51 = vmul.f32 %v1621_v26, %v1347_v43  ;;  %v1631_v52 = vpop.eup %1630 }
 0x308   : > { %v1370_v41 = vmul.f32 %v1619_v59, %v1366_v55  ;;  %v1352_v9 = vmul.f32 %v1623_v20, %v1348_v8 }
 0x309   : > { %v1373_v37 = vadd.f32 0.2548296, %v1369_v48  ;;  %v1355_v18 = vadd.f32 1.4214138, %v1351_v51 }
 0x30a   : > { %v1374_v15 = vadd.f32 0.2548296, %v1370_v41  ;;  %v1356_v17 = vadd.f32 1.4214138, %v1352_v9 }
 0x30b   : > { %v1377_v54 = vmul.f32 %v1617_v39, %v1373_v37  ;;  %v1359_v58 = vmul.f32 %v1621_v26, %v1355_v18 }
 0x30c   : > { %v1378_v46 = vmul.f32 %v1619_v59, %v1374_v15  ;;  %v1360_v3 = vmul.f32 %v1623_v20, %v1356_v17 }
 0x30d   : > { %v1397_v38 = vmul.f32 %v1625_v53, %v1377_v54  ;;  %v1363_v44 = vadd.f32 -0.28449672, %v1359_v58 }
 0x30e   : > { %v1398_v6 = vmul.f32 %v1627_v61, %v1378_v46  ;;  %v1364_v5 = vadd.f32 -0.28449672, %v1360_v3 }
 0x30f   : > { %v1401_v13 = vsub.f32 1.0, %v1397_v38  ;;  %v1367_v42 = vmul.f32 %v1621_v26, %v1363_v44 }
 0x310   : > { %v1402_v47 = vsub.f32 1.0, %v1398_v6  ;;  %v1368_v56 = vmul.f32 %v1623_v20, %v1364_v5 }
 0x311   : > { %v1409_v57 = vsub.f32 0.0, %v1401_v13  ;;  %v1371_v28 = vadd.f32 0.2548296, %v1367_v42 }
 0x312   : > { %v1410_v22 = vsub.f32 0.0, %v1402_v47  ;;  %v1372_v39 = vadd.f32 0.2548296, %v1368_v56 }
 0x313   : > { %v1413_v59 = vsel %vm1405_vm4, %v1401_v13, %v1409_v57  ;;  %v1375_v10 = vmul.f32 %v1621_v26, %v1371_v28 }
 0x314   : > { %v1414_v4 = vsel %vm1406_vm10, %v1402_v47, %v1410_v22  ;;  %v1421_v24 = vadd.f32 1.0, %v1413_v59  ;;  %v1376_v19 = vmul.f32 %v1623_v20, %v1372_v39 }
 0x315   : > { %v1422_v63 = vadd.f32 1.0, %v1414_v4  ;;  %v1395_v49 = vmul.f32 %v1629_v16, %v1375_v10 }
 0x316   : > { %v1425_v29 = vmul.f32 %v1421_v24, %v1417_v32  ;;  %v1396_v30 = vmul.f32 %v1631_v52, %v1376_v19 }
 0x317   : > { %v1426_v50 = vmul.f32 %v1422_v63, %v1418_v2  ;;  %v1399_v45 = vsub.f32 1.0, %v1395_v49 }
 0x318   : > { %1451 = vmatpush.msra.mxu2 %v1425_v29  ;;  %v1400_v7 = vsub.f32 1.0, %v1396_v30 }
 0x319   : > { %1471 = vmatpush.msra.mxu3 %v1426_v50  ;;  %v1407_v0 = vsub.f32 0.0, %v1399_v45 }
 0x31a   : > { %v1408_v33 = vsub.f32 0.0, %v1400_v7 }
 0x31b   : > { %v1411_v26 = vsel %vm1403_vm8, %v1399_v45, %v1407_v0 }
 0x31c   : > { %v1419_v20 = vadd.f32 1.0, %v1411_v26  ;;  %v1412_v23 = vsel %vm1404_vm9, %v1400_v7, %v1408_v33 }
 0x31d   : > { %v1420_v35 = vadd.f32 1.0, %v1412_v23 }
 0x31e   : > { %v1423_v31 = vmul.f32 %v1419_v20, %v1415_v60 }
 0x31f   : > { %v1424_v36 = vmul.f32 %v1420_v35, %v1416_v34 }
 0x320   : > { %1452 = vmatpush.msra.mxu2 %v1423_v31 }
 0x321   : > { %1472 = vmatpush.msra.mxu3 %v1424_v36  ;;  %1546 = vmatmul.msk.f32.vlgmr.msra.gmra.mxu2 %vm2599_vm12, %v1427_v1 }
 0x322   : > { %1547 = vmatmul.msk.f32.vlgmr.msra.gmra.mxu3 %vm2600_vm15, %v1427_v1 }
 0x3a4   : > { %v1454_v62 = vpop.f32.mrf.mxu2 }
 0x3a5   : > { %v1455_v21 = vadd.f32 %v1454_v62, %v1432_v25  ;;  %v1474_v14 = vpop.f32.mrf.mxu3 }
 0x3a6   : > { %v1475_v55 = vadd.f32 %v1474_v14, %v1432_v25 }
 0x3a7   : > { %1477 = vst [vmem:[%s494_s16] sm:$0xff] %v1455_v21 }
 0x3a8   : > { %1478 = vst [vmem:[%s494_s16 + $0x8] sm:$0xff] %v1475_v55 }
 0x3a9 PF: > { %s25_s18 = sadd.s32 1, %s1638_s18  }
 0x3aa   : > { %p22_p4 = scmp.ge.s32.totalorder %s25_s18, 4  }
 0x3ac   :  { %24 = sbr.rel (!%p22_p4) target bundleno = 1 (0x1), region = 111 }

</bundles_post_ra>
